<compile_context>
chip_gen: v5e
topology: v5e:2x2
jax: 0.10.0
libtpu: 0.0.40
codegen_flags: <defaults>
</compile_context>

<pallas_src>
import functools

import jax
import jax.numpy as jnp
from jax.experimental import pallas as pl
from jax.experimental.pallas import tpu as pltpu


def _round_up(x, m):
    return ((x + m - 1) // m) * m


def _eqvar_kernel(pair_i_ref, pair_j_ref, diff_ref, i1_ref, px_ref, w_ref,
                  px_out_ref, ix_out_ref, acc_ref, giota_ref, siota_ref,
                  *, mxu_dtype):
    """One grid step processes one block of pairs.

    pair_i_ref : (1, TP)   int32  (row layout -> pre-transposed scatter one-hot, no vxpose)
    pair_j_ref : (TP, 1)   int32  (padded entries hold n_atoms -> all-zero one-hot rows)
    diff_ref   : (TP, 3)
    i1_ref     : (TP, Cin)
    px_ref     : (A, 3*Cin)        resident across the grid
    w_ref      : (Cin, Cout)       W^T, resident
    px_out_ref : (A, 3*Cout)       resident output, written at the last step
    ix_out_ref : (TP, 3*Cin)       lane-dense per-block output
    acc_ref    : (A, 3*Cin) f32    persistent accumulator (scratch)
    giota_ref  : (TP, A) int32     grid-invariant gather iota (scratch, filled at k == 0)
    siota_ref  : (A, TP) int32     grid-invariant scatter iota (scratch, filled at k == 0)
    """
    k = pl.program_id(0)
    tp = i1_ref.shape[0]
    n_atoms = px_ref.shape[0]
    c_in = i1_ref.shape[1]
    c_out = w_ref.shape[1]

    @pl.when(k == 0)
    def _():
        acc_ref[...] = jnp.zeros_like(acc_ref)
        giota_ref[...] = jax.lax.broadcasted_iota(jnp.int32, (tp, n_atoms), 1)
        siota_ref[...] = jax.lax.broadcasted_iota(jnp.int32, (n_atoms, tp), 0)

    pj = pair_j_ref[...]                                   # (TP, 1)
    pi = pair_i_ref[...]                                   # (1, TP)

    # One-hots (0/1 are exact in any dtype).  gather_oh is (TP, A); scatter_oh_t is built
    # already transposed as (A, TP) so both matmuls are plain last-dim contractions.
    gather_oh = (giota_ref[...] == pj).astype(mxu_dtype)       # (TP, A)
    scatter_oh_t = (siota_ref[...] == pi).astype(mxu_dtype)    # (A, TP)

    # ---- PIXLayer gather px[pair_j] on the MXU ----
    px_j = jnp.dot(gather_oh, px_ref[...].astype(mxu_dtype),
                   preferred_element_type=jnp.float32)         # (TP, 3*Cin) f32

    # ---- ScaleLayer + IPLayer scatter-add, unrolled over the 3 spatial components ----
    # Elementwise math stays in f32 (v5e has no bf16 VPU path); only matmul operands are cast.
    i1_b = i1_ref[...].astype(jnp.float32)                     # (TP, Cin)
    d = diff_ref[...].astype(jnp.float32)                      # (TP, 3)
    for v in range(3):
        sl = slice(v * c_in, (v + 1) * c_in)
        # Same per-element FP order as the reference: px_j*i1 + diff*i1.
        ix_v = px_j[:, sl] * i1_b + d[:, v:v + 1] * i1_b       # (TP, Cin) f32
        ix_out_ref[:, sl] = ix_v.astype(ix_out_ref.dtype)
        # Segment-sum scatter: acc[:, sl] += onehot(pair_i)^T @ ix_v   (MXU, f32 accumulate)
        acc_ref[:, sl] += jnp.dot(scatter_oh_t, ix_v.astype(mxu_dtype),
                                  preferred_element_type=jnp.float32)

    # ---- pp_layer: three (A, Cin) @ (Cin, Cout) matmuls at the last pair block ----
    @pl.when(k == pl.num_programs(0) - 1)
    def _():
        w = w_ref[...].astype(mxu_dtype)                       # (Cin, Cout)
        for v in range(3):
            px_out_ref[:, v * c_out:(v + 1) * c_out] = jnp.dot(
                acc_ref[:, v * c_in:(v + 1) * c_in].astype(mxu_dtype), w,
                preferred_element_type=jnp.float32).astype(px_out_ref.dtype)


def eqvar_layer(px, pair_i, pair_j, diff, i1, weight, *, block_pairs=None,
                mxu_dtype=jnp.bfloat16):
    """Pallas TPU implementation of EqvarLayer.forward.

    px      : (n_atoms, 3, in_features)
    pair_i  : (n_pairs,) int
    pair_j  : (n_pairs,) int
    diff    : (n_pairs, 3)
    i1      : (n_pairs, 1, in_features)
    weight  : (out_features, in_features)   -- the pp_layer nn.Linear weight
    mxu_dtype : dtype for MXU operands (bf16 = fast path; f32 = exact path)
    Returns (px_out (n_atoms, 3, out_features), ix (n_pairs, 3, in_features)).
    """
    n_atoms, three, c_in = px.shape
    assert three == 3
    n_pairs = int(pair_i.shape[0])
    c_out = weight.shape[0]
    dtype = px.dtype

    # --- block size (pair axis).  Must be a multiple of 128 (pair_i row layout is lane-major
    # and the ix output is lane/sublane dense); v7x-aware default to keep one-hots small. ---
    if block_pairs is None:
        block_pairs = 256
        if n_atoms * block_pairs * 4 > (8 << 20):   # keep (TP, A) intermediates modest (v7x 64 MiB)
            block_pairs = 128
    block_pairs = max(128, _round_up(int(block_pairs), 128))
    block_pairs = min(block_pairs, _round_up(max(n_pairs, 1), 128))
    p_pad = _round_up(max(n_pairs, 1), block_pairs)
    num_blocks = p_pad // block_pairs
    pad = p_pad - n_pairs

    # --- wrapper-side layout plumbing: flatten channels-last, pad the pair axis.
    # Padded pair indices are set to n_atoms so their one-hot rows/cols are all zeros. ---
    pair_i_p = jnp.pad(pair_i.astype(jnp.int32), (0, pad),
                       constant_values=n_atoms)[None, :]            # (1, Pp)  row layout
    pair_j_p = jnp.pad(pair_j.astype(jnp.int32), (0, pad),
                       constant_values=n_atoms)[:, None]            # (Pp, 1)  column layout
    diff_p = jnp.pad(diff.astype(dtype), ((0, pad), (0, 0)))        # (Pp, 3)
    i1_p = jnp.pad(i1.reshape(n_pairs, c_in).astype(dtype),
                   ((0, pad), (0, 0)))                              # (Pp, Cin)
    px_flat = px.reshape(n_atoms, 3 * c_in)                         # (A, 3*Cin)
    w_t = weight.T.astype(dtype)                                    # (Cin, Cout)

    # --- explicit VMEM budget (resident + double-buffered blocks + one-hot temporaries) ---
    itemsize = jnp.dtype(dtype).itemsize
    mxu_itemsize = jnp.dtype(mxu_dtype).itemsize
    lp = lambda n: _round_up(n, 128)   # lane padding
    sp = lambda n: _round_up(n, 8)     # sublane padding
    resident = (sp(n_atoms) * lp(3 * c_in) * (itemsize + 4)          # px + acc
                + sp(n_atoms) * lp(3 * c_out) * itemsize             # px_out
                + sp(c_in) * lp(c_out) * itemsize                    # W^T
                + sp(block_pairs) * lp(n_atoms) * 4                  # gather iota
                + sp(n_atoms) * lp(block_pairs) * 4)                 # scatter iota
    per_block = 2 * (lp(block_pairs) * 4                             # pair_i (1, TP)
                     + sp(block_pairs) * lp(1) * 4                   # pair_j (TP, 1)
                     + sp(block_pairs) * lp(3) * itemsize            # diff
                     + sp(block_pairs) * lp(c_in) * itemsize         # i1
                     + sp(block_pairs) * lp(3 * c_in) * itemsize)    # ix out
    temporaries = (sp(block_pairs) * lp(n_atoms)
                   + sp(n_atoms) * lp(block_pairs)) * max(mxu_itemsize, 4)
    vmem_limit = int(min(max((resident + per_block + temporaries) * 2, 32 << 20), 100 << 20))

    cost = pl.CostEstimate(
        flops=int(4 * p_pad * n_atoms * 3 * c_in        # gather + scatter one-hot matmuls
                  + 2 * n_atoms * 3 * c_in * c_out      # final Linear
                  + 4 * p_pad * 3 * c_in),              # ScaleLayer elementwise
        transcendentals=0,
        bytes_accessed=int((n_atoms * 3 * c_in + p_pad * (4 + c_in + 3 * c_in)
                            + c_in * c_out + n_atoms * 3 * c_out
                            + p_pad * 3 * c_in) * itemsize + 2 * p_pad * 4))

    grid_spec = pltpu.PrefetchScalarGridSpec(
        num_scalar_prefetch=0,
        grid=(num_blocks,),
        in_specs=[
            pl.BlockSpec((1, block_pairs), lambda k: (0, k)),           # pair_i (row layout)
            pl.BlockSpec((block_pairs, 1), lambda k: (k, 0)),           # pair_j (column layout)
            pl.BlockSpec((block_pairs, 3), lambda k: (k, 0)),           # diff
            pl.BlockSpec((block_pairs, c_in), lambda k: (k, 0)),        # i1
            pl.BlockSpec((n_atoms, 3 * c_in), lambda k: (0, 0)),        # px (resident)
            pl.BlockSpec((c_in, c_out), lambda k: (0, 0)),              # W^T (resident)
        ],
        out_specs=(
            pl.BlockSpec((n_atoms, 3 * c_out), lambda k: (0, 0)),       # px_out (resident)
            pl.BlockSpec((block_pairs, 3 * c_in), lambda k: (k, 0)),    # ix (lane-dense)
        ),
        scratch_shapes=[
            pltpu.VMEM((n_atoms, 3 * c_in), jnp.float32),               # acc
            pltpu.VMEM((block_pairs, n_atoms), jnp.int32),              # gather iota
            pltpu.VMEM((n_atoms, block_pairs), jnp.int32),              # scatter iota
        ],
    )

    px_out_flat, ix_flat = pl.pallas_call(
        functools.partial(_eqvar_kernel, mxu_dtype=mxu_dtype),
        out_shape=(
            jax.ShapeDtypeStruct((n_atoms, 3 * c_out), dtype),
            jax.ShapeDtypeStruct((p_pad, 3 * c_in), dtype),
        ),
        grid_spec=grid_spec,
        compiler_params=pltpu.CompilerParams(
            # Pair axis carries the accumulator -> reduction, keep it "arbitrary".
            dimension_semantics=("arbitrary",),
            vmem_limit_bytes=vmem_limit),
        cost_estimate=cost,
    )(pair_i_p, pair_j_p, diff_p, i1_p, px_flat, w_t)

    px_out = px_out_flat.reshape(n_atoms, 3, c_out)
    ix = ix_flat[:n_pairs].reshape(n_pairs, 3, c_in)
    return px_out, ix


def eqvar_layer_reference(px, pair_i, pair_j, diff, i1, weight):
    """Pure-JAX reference mirroring the PyTorch forward."""
    px_j = px[pair_j]
    ix = px_j * i1 + diff[..., None] * i1
    acc = jnp.zeros((px.shape[0],) + ix.shape[1:], px.dtype).at[pair_i].add(ix)
    px_out = jnp.einsum("nvc,oc->nvo", acc, weight)
    return px_out, ix


def _rel_err(a, b):
    return float(jnp.max(jnp.abs(a - b)) / (jnp.max(jnp.abs(b)) + 1e-6))


def _run_case(seed, n_atoms, n_pairs, c_in, c_out, block_pairs, mxu_dtype, tol):
    key = jax.random.PRNGKey(seed)
    k1, k2, k3, k4, k5, k6 = jax.random.split(key, 6)
    px = jax.random.normal(k1, (n_atoms, 3, c_in), jnp.float32)
    pair_i = jax.random.randint(k2, (n_pairs,), 0, n_atoms, jnp.int32)
    pair_j = jax.random.randint(k3, (n_pairs,), 0, n_atoms, jnp.int32)
    diff = jax.random.normal(k4, (n_pairs, 3), jnp.float32)
    i1 = jax.random.normal(k5, (n_pairs, 1, c_in), jnp.float32)
    # pp_layer weight (out_features, in_features).
    # Note: pi_layer.w and ii_layer parameters exist in __init__ but are UNUSED in forward.
    weight = 0.1 * jax.random.normal(k6, (c_out, c_in), jnp.float32)

    px_out, ix = jax.block_until_ready(
        eqvar_layer(px, pair_i, pair_j, diff, i1, weight,
                    block_pairs=block_pairs, mxu_dtype=mxu_dtype))
    px_ref, ix_ref = eqvar_layer_reference(px, pair_i, pair_j, diff, i1, weight)

    assert px_out.shape == (n_atoms, 3, c_out) and ix.shape == (n_pairs, 3, c_in)
    e_ix = _rel_err(ix, ix_ref)
    e_px = _rel_err(px_out, px_ref)
    assert e_ix < tol, ("ix mismatch", e_ix)
    assert e_px < tol, ("px_out mismatch", e_px)


if __name__ == "__main__":
    # Case 1: exact f32 MXU path, single pair block (PRNGKey(0)).
    _run_case(0, n_atoms=8, n_pairs=100, c_in=32, c_out=48,
              block_pairs=None, mxu_dtype=jnp.float32, tol=1e-4)
    # Case 2: default bf16 MXU path, multiple pair blocks, non-multiple-of-8 atom count.
    _run_case(1, n_atoms=10, n_pairs=300, c_in=32, c_out=48,
              block_pairs=128, mxu_dtype=jnp.bfloat16, tol=2e-2)
    print("KERNEL_OK")
</pallas_src>

<mosaic_0001>
module attributes {stable_mosaic.version = 11 : i64} {
  func.func @_eqvar_kernel(%arg0: i32, %arg1: memref<1x128xi32, #tpu.memory_space<vmem>>, %arg2: memref<128x1xi32, #tpu.memory_space<vmem>>, %arg3: memref<128x3xf32, #tpu.memory_space<vmem>>, %arg4: memref<128x32xf32, #tpu.memory_space<vmem>>, %arg5: memref<8x96xf32, #tpu.memory_space<vmem>>, %arg6: memref<32x48xf32, #tpu.memory_space<vmem>>, %arg7: memref<8x144xf32, #tpu.memory_space<vmem>>, %arg8: memref<128x96xf32, #tpu.memory_space<vmem>>, %arg9: memref<8x96xf32, #tpu.memory_space<vmem>>, %arg10: memref<128x8xi32, #tpu.memory_space<vmem>>, %arg11: memref<8x128xi32, #tpu.memory_space<vmem>>) attributes {dimension_semantics = [#tpu.dimension_semantics<arbitrary>], iteration_bounds = array<i64: 1>, scalar_prefetch = 0 : i64, scratch_operands = 3 : i64, tpu.core_type = #tpu.core_type<tc>, window_params = [{transform_indices = @transform_0, window_bounds = array<i64: 1, 128>}, {transform_indices = @transform_1, window_bounds = array<i64: 128, 1>}, {transform_indices = @transform_2, window_bounds = array<i64: 128, 3>}, {transform_indices = @transform_3, window_bounds = array<i64: 128, 32>}, {pipeline_mode = #tpu.pipeline_mode<synchronous>, transform_indices = @transform_4, window_bounds = array<i64: 8, 96>}, {pipeline_mode = #tpu.pipeline_mode<synchronous>, transform_indices = @transform_5, window_bounds = array<i64: 32, 48>}, {pipeline_mode = #tpu.pipeline_mode<synchronous>, transform_indices = @transform_6, window_bounds = array<i64: 8, 144>}, {transform_indices = @transform_7, window_bounds = array<i64: 128, 96>}]} {
    %c0_i32 = arith.constant 0 : i32
    %0 = arith.cmpi eq, %arg0, %c0_i32 : i32
    %1 = arith.extui %0 : i1 to i32
    %c0_i32_0 = arith.constant 0 : i32
    %2 = arith.cmpi ne, %1, %c0_i32_0 : i32
    scf.if %2 {
      %cst_35 = arith.constant 0.000000e+00 : f32
      %55 = vector.broadcast %cst_35 : f32 to vector<8x96xf32>
      %c0_36 = arith.constant 0 : index
      %c0_37 = arith.constant 0 : index
      %56 = vector.load %arg9[%c0_36, %c0_37] : memref<8x96xf32, #tpu.memory_space<vmem>>, vector<8x96xf32>
      tpu.vector_store %arg9[%c0_36, %c0_37], %55 {strides = array<i32>} : memref<8x96xf32, #tpu.memory_space<vmem>>, vector<8x96xf32>,
      %57 = tpu.iota {dimensions = array<i32: 1>} : vector<128x8xi32>
      %c0_38 = arith.constant 0 : index
      %c0_39 = arith.constant 0 : index
      %58 = vector.load %arg10[%c0_38, %c0_39] : memref<128x8xi32, #tpu.memory_space<vmem>>, vector<128x8xi32>
      tpu.vector_store %arg10[%c0_38, %c0_39], %57 {strides = array<i32>} : memref<128x8xi32, #tpu.memory_space<vmem>>, vector<128x8xi32>,
      %59 = tpu.iota {dimensions = array<i32: 0>} : vector<8x128xi32>
      %c0_40 = arith.constant 0 : index
      %c0_41 = arith.constant 0 : index
      %60 = vector.load %arg11[%c0_40, %c0_41] : memref<8x128xi32, #tpu.memory_space<vmem>>, vector<8x128xi32>
      tpu.vector_store %arg11[%c0_40, %c0_41], %59 {strides = array<i32>} : memref<8x128xi32, #tpu.memory_space<vmem>>, vector<8x128xi32>,
    } else {
    }
    %c0 = arith.constant 0 : index
    %c0_1 = arith.constant 0 : index
    %3 = vector.load %arg2[%c0, %c0_1] : memref<128x1xi32, #tpu.memory_space<vmem>>, vector<128x1xi32>
    %c0_2 = arith.constant 0 : index
    %c0_3 = arith.constant 0 : index
    %4 = vector.load %arg1[%c0_2, %c0_3] : memref<1x128xi32, #tpu.memory_space<vmem>>, vector<1x128xi32>
    %c0_4 = arith.constant 0 : index
    %c0_5 = arith.constant 0 : index
    %5 = vector.load %arg10[%c0_4, %c0_5] : memref<128x8xi32, #tpu.memory_space<vmem>>, vector<128x8xi32>
    %6 = vector.broadcast %3 : vector<128x1xi32> to vector<128x8xi32>
    %7 = arith.cmpi eq, %5, %6 : vector<128x8xi32>
    %8 = arith.extui %7 : vector<128x8xi1> to vector<128x8xi32>
    %9 = arith.sitofp %8 : vector<128x8xi32> to vector<128x8xf32>
    %c0_6 = arith.constant 0 : index
    %c0_7 = arith.constant 0 : index
    %10 = vector.load %arg11[%c0_6, %c0_7] : memref<8x128xi32, #tpu.memory_space<vmem>>, vector<8x128xi32>
    %11 = vector.broadcast %4 : vector<1x128xi32> to vector<8x128xi32>
    %12 = arith.cmpi eq, %10, %11 : vector<8x128xi32>
    %13 = arith.extui %12 : vector<8x128xi1> to vector<8x128xi32>
    %14 = arith.sitofp %13 : vector<8x128xi32> to vector<8x128xf32>
    %c0_8 = arith.constant 0 : index
    %c0_9 = arith.constant 0 : index
    %15 = vector.load %arg5[%c0_8, %c0_9] : memref<8x96xf32, #tpu.memory_space<vmem>>, vector<8x96xf32>
    %cst = arith.constant dense<0.000000e+00> : vector<128x96xf32>
    %16 = tpu.matmul %9, %15, %cst {dimension_numbers = #tpu.dot_dimension_numbers<[1], [0], [0], [1], [0, 0, 1, 1], [], []>} : vector<128x8xf32>, vector<8x96xf32>, vector<128x96xf32> -> vector<128x96xf32>
    %c0_10 = arith.constant 0 : index
    %c0_11 = arith.constant 0 : index
    %17 = vector.load %arg4[%c0_10, %c0_11] : memref<128x32xf32, #tpu.memory_space<vmem>>, vector<128x32xf32>
    %c0_12 = arith.constant 0 : index
    %c0_13 = arith.constant 0 : index
    %18 = vector.load %arg3[%c0_12, %c0_13] : memref<128x3xf32, #tpu.memory_space<vmem>>, vector<128x3xf32>
    %19 = vector.extract_strided_slice %16 {offsets = [0, 0], sizes = [128, 32], strides = [1, 1]} : vector<128x96xf32> to vector<128x32xf32>
    %20 = arith.mulf %19, %17 : vector<128x32xf32>
    %21 = vector.extract_strided_slice %18 {offsets = [0, 0], sizes = [128, 1], strides = [1, 1]} : vector<128x3xf32> to vector<128x1xf32>
    %22 = vector.broadcast %21 : vector<128x1xf32> to vector<128x32xf32>
    %23 = arith.mulf %22, %17 : vector<128x32xf32>
    %24 = arith.addf %20, %23 : vector<128x32xf32>
    %c0_14 = arith.constant 0 : index
    %c0_15 = arith.constant 0 : index
    %25 = vector.load %arg8[%c0_14, %c0_15] : memref<128x96xf32, #tpu.memory_space<vmem>>, vector<128x32xf32>
    tpu.vector_store %arg8[%c0_14, %c0_15], %24 {strides = array<i32>} : memref<128x96xf32, #tpu.memory_space<vmem>>, vector<128x32xf32>,
    %c0_16 = arith.constant 0 : index
    %c0_17 = arith.constant 0 : index
    %26 = vector.load %arg9[%c0_16, %c0_17] : memref<8x96xf32, #tpu.memory_space<vmem>>, vector<8x32xf32>
    %cst_18 = arith.constant dense<0.000000e+00> : vector<8x32xf32>
    %27 = tpu.matmul %14, %24, %cst_18 {dimension_numbers = #tpu.dot_dimension_numbers<[1], [0], [0], [1], [0, 0, 1, 1], [], []>} : vector<8x128xf32>, vector<128x32xf32>, vector<8x32xf32> -> vector<8x32xf32>
    %28 = arith.addf %26, %27 : vector<8x32xf32>
    %c0_19 = arith.constant 0 : index
    %c0_20 = arith.constant 0 : index
    %29 = vector.load %arg9[%c0_19, %c0_20] : memref<8x96xf32, #tpu.memory_space<vmem>>, vector<8x32xf32>
    tpu.vector_store %arg9[%c0_19, %c0_20], %28 {strides = array<i32>} : memref<8x96xf32, #tpu.memory_space<vmem>>, vector<8x32xf32>,
    %30 = vector.extract_strided_slice %16 {offsets = [0, 32], sizes = [128, 32], strides = [1, 1]} : vector<128x96xf32> to vector<128x32xf32>
    %31 = arith.mulf %30, %17 : vector<128x32xf32>
    %32 = vector.extract_strided_slice %18 {offsets = [0, 1], sizes = [128, 1], strides = [1, 1]} : vector<128x3xf32> to vector<128x1xf32>
    %33 = vector.broadcast %32 : vector<128x1xf32> to vector<128x32xf32>
    %34 = arith.mulf %33, %17 : vector<128x32xf32>
    %35 = arith.addf %31, %34 : vector<128x32xf32>
    %c0_21 = arith.constant 0 : index
    %c32 = arith.constant 32 : index
    %36 = vector.load %arg8[%c0_21, %c32] : memref<128x96xf32, #tpu.memory_space<vmem>>, vector<128x32xf32>
    tpu.vector_store %arg8[%c0_21, %c32], %35 {strides = array<i32>} : memref<128x96xf32, #tpu.memory_space<vmem>>, vector<128x32xf32>,
    %c0_22 = arith.constant 0 : index
    %c32_23 = arith.constant 32 : index
    %37 = vector.load %arg9[%c0_22, %c32_23] : memref<8x96xf32, #tpu.memory_space<vmem>>, vector<8x32xf32>
    %cst_24 = arith.constant dense<0.000000e+00> : vector<8x32xf32>
    %38 = tpu.matmul %14, %35, %cst_24 {dimension_numbers = #tpu.dot_dimension_numbers<[1], [0], [0], [1], [0, 0, 1, 1], [], []>} : vector<8x128xf32>, vector<128x32xf32>, vector<8x32xf32> -> vector<8x32xf32>
    %39 = arith.addf %37, %38 : vector<8x32xf32>
    %c0_25 = arith.constant 0 : index
    %c32_26 = arith.constant 32 : index
    %40 = vector.load %arg9[%c0_25, %c32_26] : memref<8x96xf32, #tpu.memory_space<vmem>>, vector<8x32xf32>
    tpu.vector_store %arg9[%c0_25, %c32_26], %39 {strides = array<i32>} : memref<8x96xf32, #tpu.memory_space<vmem>>, vector<8x32xf32>,
    %41 = vector.extract_strided_slice %16 {offsets = [0, 64], sizes = [128, 32], strides = [1, 1]} : vector<128x96xf32> to vector<128x32xf32>
    %42 = arith.mulf %41, %17 : vector<128x32xf32>
    %43 = vector.extract_strided_slice %18 {offsets = [0, 2], sizes = [128, 1], strides = [1, 1]} : vector<128x3xf32> to vector<128x1xf32>
    %44 = vector.broadcast %43 : vector<128x1xf32> to vector<128x32xf32>
    %45 = arith.mulf %44, %17 : vector<128x32xf32>
    %46 = arith.addf %42, %45 : vector<128x32xf32>
    %c0_27 = arith.constant 0 : index
    %c64 = arith.constant 64 : index
    %47 = vector.load %arg8[%c0_27, %c64] : memref<128x96xf32, #tpu.memory_space<vmem>>, vector<128x32xf32>
    tpu.vector_store %arg8[%c0_27, %c64], %46 {strides = array<i32>} : memref<128x96xf32, #tpu.memory_space<vmem>>, vector<128x32xf32>,
    %c0_28 = arith.constant 0 : index
    %c64_29 = arith.constant 64 : index
    %48 = vector.load %arg9[%c0_28, %c64_29] : memref<8x96xf32, #tpu.memory_space<vmem>>, vector<8x32xf32>
    %cst_30 = arith.constant dense<0.000000e+00> : vector<8x32xf32>
    %49 = tpu.matmul %14, %46, %cst_30 {dimension_numbers = #tpu.dot_dimension_numbers<[1], [0], [0], [1], [0, 0, 1, 1], [], []>} : vector<8x128xf32>, vector<128x32xf32>, vector<8x32xf32> -> vector<8x32xf32>
    %50 = arith.addf %48, %49 : vector<8x32xf32>
    %c0_31 = arith.constant 0 : index
    %c64_32 = arith.constant 64 : index
    %51 = vector.load %arg9[%c0_31, %c64_32] : memref<8x96xf32, #tpu.memory_space<vmem>>, vector<8x32xf32>
    tpu.vector_store %arg9[%c0_31, %c64_32], %50 {strides = array<i32>} : memref<8x96xf32, #tpu.memory_space<vmem>>, vector<8x32xf32>,
    %c0_i32_33 = arith.constant 0 : i32
    %52 = arith.cmpi eq, %arg0, %c0_i32_33 : i32
    %53 = arith.extui %52 : i1 to i32
    %c0_i32_34 = arith.constant 0 : i32
    %54 = arith.cmpi ne, %53, %c0_i32_34 : i32
    scf.if %54 {
      %c0_35 = arith.constant 0 : index
      %c0_36 = arith.constant 0 : index
      %55 = vector.load %arg6[%c0_35, %c0_36] : memref<32x48xf32, #tpu.memory_space<vmem>>, vector<32x48xf32>
      %c0_37 = arith.constant 0 : index
      %c0_38 = arith.constant 0 : index
      %56 = vector.load %arg9[%c0_37, %c0_38] : memref<8x96xf32, #tpu.memory_space<vmem>>, vector<8x32xf32>
      %cst_39 = arith.constant dense<0.000000e+00> : vector<8x48xf32>
      %57 = tpu.matmul %56, %55, %cst_39 {dimension_numbers = #tpu.dot_dimension_numbers<[1], [0], [0], [1], [0, 0, 1, 1], [], []>} : vector<8x32xf32>, vector<32x48xf32>, vector<8x48xf32> -> vector<8x48xf32>
      %c0_40 = arith.constant 0 : index
      %c0_41 = arith.constant 0 : index
      %58 = vector.load %arg7[%c0_40, %c0_41] : memref<8x144xf32, #tpu.memory_space<vmem>>, vector<8x48xf32>
      tpu.vector_store %arg7[%c0_40, %c0_41], %57 {strides = array<i32>} : memref<8x144xf32, #tpu.memory_space<vmem>>, vector<8x48xf32>,
      %c0_42 = arith.constant 0 : index
      %c32_43 = arith.constant 32 : index
      %59 = vector.load %arg9[%c0_42, %c32_43] : memref<8x96xf32, #tpu.memory_space<vmem>>, vector<8x32xf32>
      %cst_44 = arith.constant dense<0.000000e+00> : vector<8x48xf32>
      %60 = tpu.matmul %59, %55, %cst_44 {dimension_numbers = #tpu.dot_dimension_numbers<[1], [0], [0], [1], [0, 0, 1, 1], [], []>} : vector<8x32xf32>, vector<32x48xf32>, vector<8x48xf32> -> vector<8x48xf32>
      %c0_45 = arith.constant 0 : index
      %c48 = arith.constant 48 : index
      %61 = vector.load %arg7[%c0_45, %c48] : memref<8x144xf32, #tpu.memory_space<vmem>>, vector<8x48xf32>
      tpu.vector_store %arg7[%c0_45, %c48], %60 {strides = array<i32>} : memref<8x144xf32, #tpu.memory_space<vmem>>, vector<8x48xf32>,
      %c0_46 = arith.constant 0 : index
      %c64_47 = arith.constant 64 : index
      %62 = vector.load %arg9[%c0_46, %c64_47] : memref<8x96xf32, #tpu.memory_space<vmem>>, vector<8x32xf32>
      %cst_48 = arith.constant dense<0.000000e+00> : vector<8x48xf32>
      %63 = tpu.matmul %62, %55, %cst_48 {dimension_numbers = #tpu.dot_dimension_numbers<[1], [0], [0], [1], [0, 0, 1, 1], [], []>} : vector<8x32xf32>, vector<32x48xf32>, vector<8x48xf32> -> vector<8x48xf32>
      %c0_49 = arith.constant 0 : index
      %c96 = arith.constant 96 : index
      %64 = vector.load %arg7[%c0_49, %c96] : memref<8x144xf32, #tpu.memory_space<vmem>>, vector<8x48xf32>
      tpu.vector_store %arg7[%c0_49, %c96], %63 {strides = array<i32>} : memref<8x144xf32, #tpu.memory_space<vmem>>, vector<8x48xf32>,
    } else {
    }
    return
  }
  func.func @transform_0(%arg0: i32) -> (i32, i32) {
    %c0_i32 = arith.constant 0 : i32
    %c0_i32_0 = arith.constant 0 : i32
    return %c0_i32, %arg0 : i32, i32
  }
  func.func @transform_1(%arg0: i32) -> (i32, i32) {
    %c0_i32 = arith.constant 0 : i32
    %c0_i32_0 = arith.constant 0 : i32
    return %arg0, %c0_i32 : i32, i32
  }
  func.func @transform_2(%arg0: i32) -> (i32, i32) {
    %c0_i32 = arith.constant 0 : i32
    %c0_i32_0 = arith.constant 0 : i32
    return %arg0, %c0_i32 : i32, i32
  }
  func.func @transform_3(%arg0: i32) -> (i32, i32) {
    %c0_i32 = arith.constant 0 : i32
    %c0_i32_0 = arith.constant 0 : i32
    return %arg0, %c0_i32 : i32, i32
  }
  func.func @transform_4(%arg0: i32) -> (i32, i32) {
    %c0_i32 = arith.constant 0 : i32
    %c0_i32_0 = arith.constant 0 : i32
    %c0_i32_1 = arith.constant 0 : i32
    return %c0_i32, %c0_i32_0 : i32, i32
  }
  func.func @transform_5(%arg0: i32) -> (i32, i32) {
    %c0_i32 = arith.constant 0 : i32
    %c0_i32_0 = arith.constant 0 : i32
    %c0_i32_1 = arith.constant 0 : i32
    return %c0_i32, %c0_i32_0 : i32, i32
  }
  func.func @transform_6(%arg0: i32) -> (i32, i32) {
    %c0_i32 = arith.constant 0 : i32
    %c0_i32_0 = arith.constant 0 : i32
    %c0_i32_1 = arith.constant 0 : i32
    return %c0_i32, %c0_i32_0 : i32, i32
  }
  func.func @transform_7(%arg0: i32) -> (i32, i32) {
    %c0_i32 = arith.constant 0 : i32
    %c0_i32_0 = arith.constant 0 : i32
    return %arg0, %c0_i32 : i32, i32
  }
}

</mosaic_0001>

<bundles_post_ra>
// kernel: tpu_custom_call.1
= control target key start
LH: loop header
LB: loop body
LE: loop exit
PB: predicated region body
PF: predicated region fallthrough
CT: control target
= control target key end

     0   :  { %v1491_v3 = vmov 1   ;;  %v1492_v4 = vmov 0   ;;  %s2597_s0 = inlined_call_operand.vmem [shape: s32[1,128], index: 0, kind: input, shape index: {}]   ;;  %s2598_s1 = inlined_call_operand.vmem [shape: s32[128,1], index: 1, kind: input, shape index: {}]   ;;  %s2599_s2 = inlined_call_operand.vmem [shape: f32[128,3], index: 2, kind: input, shape index: {}]   ;;  %s2600_s3 = inlined_call_operand.vmem [shape: f32[128,32], index: 3, kind: input, shape index: {}]   ;;  %s2601_s4 = inlined_call_operand.vmem [shape: f32[8,96], index: 4, kind: input, shape index: {}]   ;;  %s2602_s5 = inlined_call_operand.vmem [shape: f32[32,48], index: 5, kind: input, shape index: {}]   ;;  %s2603_s6 = inlined_call_operand.hbm [shape: f32[8,144], index: 6, kind: output, shape index: {0}]   ;;  %s2604_s7 = inlined_call_operand.vmem [shape: f32[128,96], index: 7, kind: output, shape index: {1}]  }
   0x1   :  { %v1544_v0 = vld [vmem:[%s2599_s2 + $0x70] sm:$0xff]  ;;  %v67_v1 = vld [vmem:[%s2598_s1 + $0x68] sm:$0xff]  ;;  %1356 = vset.pattern.permute.xlu0 %v1491_v3  ;;  %1354 = vset.pattern.permute.xlu2 %v1492_v4 }
   0x2   :  { %v56_v2 = vld [vmem:[%s2598_s1 + $0x10] sm:$0xff]  ;;  %1353 = vset.pattern.permute.xlu1 %v1492_v4  ;;  %640 = vperm.xlu0 %1356, %v1544_v0  }
   0x3   :  { %127 = vperm.xlu2 %1354, %v67_v1   ;;  %94 = vperm.xlu1 %1353, %v56_v2  }
   0x4   :  { %13 = vsyncpa [#allocation6], 0  ;;  %v1559_v5 = vld [vmem:[%s2599_s2 + $0x38] sm:$0xff]  ;;  %v66_v7 = vld [vmem:[%s2598_s1 + $0x60] sm:$0xff]  ;;  %v2607_v14 = vmov 2   ;;  %v2606_v26 = vlaneseq  ;;  %vm34_vm0 = vcmask 64512  }
   0x5   :  { %v57_v6 = vld [vmem:[%s2598_s1 + $0x18] sm:$0xff]  ;;  %v1571_v8 = vld [vmem:[%s2599_s2 + $0x10] sm:$0xff]  ;;  %v58_v9 = vld [vmem:[%s2598_s1 + $0x20] sm:$0xff]  ;;  %s1494_s21 = smov 32   ;;  %v2605_v49 = vmov 0.0   ;;  %s1496_s28 = smov 64  }
   0x6   :  { %v68_v10 = vld [vmem:[%s2598_s1 + $0x70] sm:$0xff]  ;;  %v59_v11 = vld [vmem:[%s2598_s1 + $0x28] sm:$0xff]  ;;  %v69_v12 = vld [vmem:[%s2598_s1 + $0x78] sm:$0xff]  ;;  %v33_v27 = vand.u32 127, %v2606_v26  ;;  %s1497_s15 = smov 96  }
   0x7   :  { %v334_v13 = vld [vmem:[%s2599_s2 + $0x78] sm:$0xff]  ;;  %v60_v16 = vld [vmem:[%s2598_s1 + $0x30] sm:$0xff]  ;;  %v1602_v18 = vld [vmem:[%s2599_s2 + $0x8] sm:$0xff] }
   0x8   :  { %v65_v15 = vld [vmem:[%s2598_s1 + $0x58] sm:$0xff]  ;;  %v329_v17 = vld [vmem:[%s2599_s2 + $0x50] sm:$0xff]  ;;  %v1607_v19 = vld [vmem:[%s2599_s2] sm:$0xff]  ;;  %48 = vst.msk [vmem:[#allocation3 + $0x68] sm:$0xff] %vm34_vm0, %v33_v27 }
   0x9   :  { %v1612_v20 = vld [vmem:[%s2599_s2 + $0x28] sm:$0xff]  ;;  %v1620_v21 = vld [vmem:[%s2599_s2 + $0x20] sm:$0xff]  ;;  %v1625_v22 = vld [vmem:[%s2599_s2 + $0x18] sm:$0xff]  ;;  %35 = vst.msk [vmem:[#allocation3] sm:$0xff] %vm34_vm0, %v33_v27 }
   0xa   :  { %612 = vperm.xlu0 %1356, %v1559_v5   ;;  %v54_v23 = vld [vmem:[%s2598_s1] sm:$0xff]  ;;  %v1636_v24 = vld [vmem:[%s2599_s2 + $0x30] sm:$0xff]  ;;  %v55_v25 = vld [vmem:[%s2598_s1 + $0x8] sm:$0xff]  ;;  %36 = vst.msk [vmem:[#allocation3 + $0x8] sm:$0xff] %vm34_vm0, %v33_v27 }
   0xb   :  { %97 = vperm.xlu2 %1354, %v57_v6   ;;  %124 = vperm.xlu1 %1353, %v66_v7   ;;  %v331_v28 = vld [vmem:[%s2599_s2 + $0x60] sm:$0xff]  ;;  %v332_v29 = vld [vmem:[%s2599_s2 + $0x68] sm:$0xff]  ;;  %37 = vst.msk [vmem:[#allocation3 + $0x10] sm:$0xff] %vm34_vm0, %v33_v27  ;;  %v330_v31 = vld [vmem:[%s2599_s2 + $0x58] sm:$0xff] }
   0xc   :  { %v62_v30 = vld [vmem:[%s2598_s1 + $0x40] sm:$0xff]  ;;  %38 = vst.msk [vmem:[#allocation3 + $0x18] sm:$0xff] %vm34_vm0, %v33_v27  ;;  %v63_v32 = vld [vmem:[%s2598_s1 + $0x48] sm:$0xff]  ;;  %v64_v34 = vld [vmem:[%s2598_s1 + $0x50] sm:$0xff] }
   0xd   :  { %39 = vst.msk [vmem:[#allocation3 + $0x20] sm:$0xff] %vm34_vm0, %v33_v27  ;;  %v328_v33 = vld [vmem:[%s2599_s2 + $0x48] sm:$0xff]  ;;  %v327_v35 = vld [vmem:[%s2599_s2 + $0x40] sm:$0xff]  ;;  %v61_v36 = vld [vmem:[%s2598_s1 + $0x38] sm:$0xff] }
   0xe   :  { %40 = vst.msk [vmem:[#allocation3 + $0x28] sm:$0xff] %vm34_vm0, %v33_v27  ;;  %v188_v38 = vld [vmem:[%s2601_s4] sm:$0xff]  ;;  %v1708_v42 = vld [vmem:[%s2600_s3 + $0x78] sm:$0xff] }
   0xf   :  { %41 = vst.msk [vmem:[#allocation3 + $0x30] sm:$0xff] %vm34_vm0, %v33_v27  ;;  %1342 = vmatpush.msra.mxu2 %v188_v38  ;;  %253 = vmatpush.msra.mxu0 %v188_v38  ;;  %v84_v51 = vld [vmem:[#allocation3 + $0x68] sm:$0xff]  ;;  %v1762_v6 = vld [vmem:[%s2600_s3 + $0x60] sm:$0xff] }
  0x10   :  { %42 = vst.msk [vmem:[#allocation3 + $0x38] sm:$0xff] %vm34_vm0, %v33_v27  ;;  %1341 = vmatpush.msra.mxu1 %v188_v38 }
  0x11   :  { %43 = vst.msk [vmem:[#allocation3 + $0x40] sm:$0xff] %vm34_vm0, %v33_v27 }
  0x12   :  { %592 = vperm.xlu0 %1356, %v1571_v8   ;;  %44 = vst.msk [vmem:[#allocation3 + $0x48] sm:$0xff] %vm34_vm0, %v33_v27 }
  0x13   :  { %100 = vperm.xlu2 %1354, %v58_v9   ;;  %130 = vperm.xlu1 %1353, %v68_v10   ;;  %45 = vst.msk [vmem:[#allocation3 + $0x50] sm:$0xff] %vm34_vm0, %v33_v27 }
  0x14   :  { %46 = vst.msk [vmem:[#allocation3 + $0x58] sm:$0xff] %vm34_vm0, %v33_v27 }
  0x15   :  { %47 = vst.msk [vmem:[#allocation3 + $0x60] sm:$0xff] %vm34_vm0, %v33_v27 }
  0x16   :  { %49 = vst.msk [vmem:[#allocation3 + $0x70] sm:$0xff] %vm34_vm0, %v33_v27 }
  0x17   :  { %50 = vst.msk [vmem:[#allocation3 + $0x78] sm:$0xff] %vm34_vm0, %v33_v27  ;;  %v1806_v27 = vld [vmem:[%s2600_s3 + $0x58] sm:$0xff] }
  0x1a   :  { %1363 = vset.pattern.permute.xlu0 %v2607_v14 }
  0x1b   :  { %103 = vperm.xlu2 %1354, %v59_v11   ;;  %133 = vperm.xlu1 %1353, %v69_v12   ;;  %v71_v11 = vld [vmem:[#allocation3] sm:$0xff]  ;;  %v1774_v12 = vld [vmem:[%s2600_s3 + $0x70] sm:$0xff] }
  0x1c   :  { %976 = vperm.xlu0 %1363, %v334_v13   ;;  %v83_v45 = vld [vmem:[#allocation3 + $0x60] sm:$0xff] }
  0x1d   :  { %v85_v56 = vld [vmem:[#allocation3 + $0x70] sm:$0xff] }
  0x1e   :  { %v86_v61 = vld [vmem:[#allocation3 + $0x78] sm:$0xff] }
  0x23   :  { %121 = vperm.xlu2 %1354, %v65_v15   ;;  %106 = vperm.xlu1 %1353, %v60_v16   ;;  %v1786_v16 = vld [vmem:[%s2600_s3 + $0x68] sm:$0xff] }
  0x24   :  { %956 = vperm.xlu0 %1363, %v329_v17  }
  0x2b   :  { %358 = vperm.xlu2 %1354, %v1602_v18   ;;  %353 = vperm.xlu1 %1353, %v1607_v19  }
  0x2c   :  { %936 = vperm.xlu0 %1363, %v1612_v20  }
  0x33   :  { %373 = vperm.xlu2 %1354, %v1620_v21   ;;  %368 = vperm.xlu1 %1353, %v1625_v22  }
  0x34   :  { %1366 = vset.pattern.permute.xlu0 %v1492_v4 }
  0x35   :  { %88 = vperm.xlu0 %1366, %v54_v23   ;;  %v73_v23 = vld [vmem:[#allocation3 + $0x10] sm:$0xff] }
  0x3b   :  { %1355 = vset.pattern.permute.xlu2 %v1491_v3  ;;  %383 = vperm.xlu1 %1353, %v1636_v24  }
  0x3c   :  { %644 = vperm.xlu2 %1355, %v334_v13  }
  0x3d   :  { %91 = vperm.xlu0 %1366, %v55_v25  }
  0x43   :  { %1357 = vset.pattern.permute.xlu1 %v1491_v3 }
  0x44   :  { %632 = vperm.xlu2 %1355, %v331_v28   ;;  %636 = vperm.xlu1 %1357, %v332_v29  }
  0x45   :  { %112 = vperm.xlu0 %1366, %v62_v30  }
  0x4c   :  { %624 = vperm.xlu2 %1355, %v329_v17   ;;  %628 = vperm.xlu1 %1357, %v330_v31  }
  0x4d   :  { %115 = vperm.xlu0 %1366, %v63_v32   ;;  %v74_v32 = vld [vmem:[#allocation3 + $0x18] sm:$0xff] }
  0x54   :  { %1358 = vset.pattern.permute.xlu2 %v2607_v14  ;;  %620 = vperm.xlu1 %1357, %v328_v33  }
  0x55   :  { %972 = vperm.xlu2 %1358, %v1544_v0   ;;  %118 = vperm.xlu0 %1366, %v64_v34  }
  0x5c   :  { %616 = vperm.xlu1 %1357, %v327_v35  }
  0x5d   :  { %v128_v37 = vpop.permute.xlu2 %127  ;;  %968 = vperm.xlu2 %1358, %v332_v29   ;;  %109 = vperm.xlu0 %1366, %v61_v36  }
  0x5e   :  { %vm148_vm2 = vcmp.eq.s32.totalorder %v84_v51, %v128_v37  ;;  %v1823_v37 = vld [vmem:[%s2600_s3 + $0x50] sm:$0xff] }
  0x5f   :  { %v1315_v55 = vsel %vm148_vm2, 1.0, %v2605_v49  ;;  %vm743_vm2 = vcmask 523520  }
  0x64   :  { %1359 = vset.pattern.permute.xlu1 %v2607_v14 }
  0x65   :  { %1360 = vset.pattern.permute.xlu2 %v1491_v3  ;;  %v1695_v39 = vpop.permute.xlu2 %97  ;;  %964 = vperm.xlu1 %1359, %v331_v28  }
  0x66   :  { %363 = vperm.xlu0 %1366, %v1571_v8   ;;  %608 = vperm.xlu2 %1360, %v1636_v24   ;;  %vm138_vm9 = vcmp.eq.s32.totalorder %v74_v32, %v1695_v39 }
  0x67   :  { %v1305_v39 = vsel %vm138_vm9, 1.0, %v2605_v49  ;;  %vm1280_vm9 = vcmask 130048  }
  0x6d   :  { %v1699_v40 = vpop.permute.xlu2 %100  ;;  %960 = vperm.xlu1 %1359, %v330_v31  }
  0x6e   :  { %378 = vperm.xlu0 %1366, %v1612_v20   ;;  %604 = vperm.xlu2 %1360, %v1612_v20  }
  0x74   :  { %v1703_v41 = vpop.permute.xlu0 %640 }
  0x75   :  { %v1710_v43 = vpop.permute.xlu2 %103  ;;  %1361 = vset.pattern.permute.xlu1 %v1491_v3  ;;  %v1713_v44 = vpop.permute.xlu1 %94 }
  0x76   :  { %1362 = vset.pattern.permute.xlu2 %v2607_v14  ;;  %600 = vperm.xlu1 %1361, %v1620_v21   ;;  %vm137_vm7 = vcmp.eq.s32.totalorder %v73_v23, %v1713_v44  ;;  %v75_v44 = vld [vmem:[#allocation3 + $0x20] sm:$0xff]  ;;  %v1904_v23 = vld [vmem:[%s2600_s3 + $0x30] sm:$0xff] }
  0x77   :  { %952 = vperm.xlu2 %1362, %v328_v33   ;;  %549 = vrot.lane.b32.xlu0 %v1708_v42, %s1494_s21  ;;  %v1304_v31 = vsel %vm137_vm7, 1.0, %v2605_v49  ;;  %v80_v33 = vld [vmem:[#allocation3 + $0x48] sm:$0xff]  ;;  %vm139_vm11 = vcmp.eq.s32.totalorder %v75_v44, %v1699_v40  ;;  %vm1246_vm7 = vcmask 785792  }
  0x78   :  { %v76_v40 = vld [vmem:[#allocation3 + $0x28] sm:$0xff] }
  0x79   :  { %vm140_vm13 = vcmp.eq.s32.totalorder %v76_v40, %v1710_v43  ;;  %v1976_v40 = vld [vmem:[%s2600_s3 + $0x10] sm:$0xff] }
  0x7c   :  { %v1719_v46 = vpop.permute.xlu0 %612 }
  0x7d   :  { %v1721_v47 = vpop.permute.xlu2 %121  ;;  %v125_v48 = vpop.permute.xlu1 %124 }
  0x7e   :  { %vm147_vm1 = vcmp.eq.s32.totalorder %v83_v45, %v125_v48  ;;  %596 = vperm.xlu1 %1361, %v1625_v22   ;;  %v1837_v45 = vld [vmem:[%s2600_s3 + $0x48] sm:$0xff]  ;;  %v81_v48 = vld [vmem:[#allocation3 + $0x50] sm:$0xff] }
  0x7f   :  { %948 = vperm.xlu2 %1362, %v327_v35   ;;  %v1314_v50 = vsel %vm147_vm1, 1.0, %v2605_v49 }
  0x80   :  { %1331 = vmatmul.msk.f32.vlgmr.msra.gmra.mxu2 %vm34_vm0, %v1314_v50 }
  0x84   :  { %v1726_v52 = vpop.permute.xlu0 %592 }
  0x85   :  { %v1728_v53 = vpop.permute.xlu2 %358  ;;  %v131_v54 = vpop.permute.xlu1 %130 }
  0x86   :  { %1364 = vset.pattern.permute.xlu1 %v2607_v14  ;;  %vm149_vm3 = vcmp.eq.s32.totalorder %v85_v56, %v131_v54 }
  0x87   :  { %1365 = vset.pattern.permute.xlu2 %v1491_v3  ;;  %944 = vperm.xlu1 %1364, %v1559_v5   ;;  %v1316_v60 = vsel %vm149_vm3, 1.0, %v2605_v49  ;;  %vm1075_vm3 = vcmask 785920  }
  0x88   :  { %588 = vperm.xlu2 %1365, %v1602_v18   ;;  %1332 = vmatmul.msk.f32.gmra.mxu2 %vm34_vm0, %v1315_v55 }
  0x8d   :  { %v1736_v57 = vpop.permute.xlu2 %373  ;;  %v134_v58 = vpop.permute.xlu1 %133 }
  0x8e   :  { %v1738_v59 = vpop.permute.xlu0 %976  ;;  %vm150_vm4 = vcmp.eq.s32.totalorder %v86_v61, %v134_v58  ;;  %v82_v61 = vld [vmem:[#allocation3 + $0x58] sm:$0xff] }
  0x8f   :  { %940 = vperm.xlu1 %1364, %v1636_v24   ;;  %v1317_v1 = vsel %vm150_vm4, 1.0, %v2605_v49  ;;  %v79_v24 = vld [vmem:[#allocation3 + $0x40] sm:$0xff]  ;;  %vm146_vm14 = vcmp.eq.s32.totalorder %v82_v61, %v1721_v47  ;;  %v77_v47 = vld [vmem:[#allocation3 + $0x30] sm:$0xff] }
  0x90   :  { %584 = vperm.xlu2 %1365, %v1607_v19   ;;  %1333 = vmatmul.msk.f32.gmra.mxu2 %vm34_vm0, %v1316_v60  ;;  %v1306_v60 = vsel %vm139_vm11, 1.0, %v2605_v49  ;;  %v1981_v61 = vld [vmem:[%s2600_s3 + $0x8] sm:$0xff] }
  0x95   :  { %v1744_v62 = vpop.permute.xlu1 %106 }
  0x96   :  { %v645_v63 = vpop.permute.xlu2 %644  ;;  %v1746_v0 = vpop.permute.xlu0 %956  ;;  %vm141_vm15 = vcmp.eq.s32.totalorder %v77_v47, %v1744_v62  ;;  %v78_v62 = vld [vmem:[#allocation3 + $0x38] sm:$0xff] }
  0x97   :  { %v662_v2 = vmul.f32 %v645_v63, %v1708_v42  ;;  %932 = vperm.xlu1 %1364, %v1620_v21  }
  0x98   :  { %1367 = vset.pattern.permute.xlu2 %v2607_v14  ;;  %1334 = vmatmul.msk.f32.gmra.mxu2 %vm34_vm0, %v1317_v1  ;;  %v994_v1 = vmul.f32 %v1738_v59, %v1708_v42 }
  0x99   :  { %928 = vperm.xlu2 %1367, %v1625_v22   ;;  %709 = vrot.lane.b32.xlu0 %v662_v2, %s1494_s21  ;;  %v1859_v2 = vld [vmem:[%s2600_s3 + $0x40] sm:$0xff] }
  0x9d   :  { %v1755_v3 = vpop.permute.xlu1 %353 }
  0x9e   :  { %v1757_v5 = vpop.permute.xlu0 %936  ;;  %v633_v7 = vpop.permute.xlu2 %632 }
  0x9f   :  { %924 = vperm.xlu1 %1364, %v1571_v8   ;;  %v659_v9 = vmul.f32 %v633_v7, %v1762_v6  ;;  %v1307_v7 = vsel %vm140_vm13, 1.0, %v2605_v49 }
  0xa1   :  { %920 = vperm.xlu2 %1367, %v1602_v18   ;;  %543 = vrot.lane.b32.xlu0 %v1762_v6, %s1494_s21  ;;  %v72_v18 = vld [vmem:[#allocation3 + $0x8] sm:$0xff] }
  0xa5   :  { %v1769_v10 = vpop.permute.xlu1 %368 }
  0xa6   :  { %v625_v13 = vpop.permute.xlu2 %624 }
  0xa7   :  { %916 = vperm.xlu1 %1364, %v1607_v19   ;;  %v89_v15 = vpop.permute.xlu0 %88  ;;  %v661_v19 = vmul.f32 %v1703_v41, %v1774_v12  ;;  %v657_v51 = vmul.f32 %v625_v13, %v1823_v37 }
  0xa8   :  { %vm135_vm5 = vcmp.eq.s32.totalorder %v71_v11, %v89_v15  ;;  %v1308_v15 = vsel %vm141_vm15, 1.0, %v2605_v49 }
  0xa9   :  { %v1302_v8 = vsel %vm135_vm5, 1.0, %v2605_v49  ;;  %547 = vrot.lane.b32.xlu2 %v1774_v12, %s1494_s21  ;;  %703 = vrot.lane.b32.xlu0 %v659_v9, %s1494_s21  ;;  %v1865_v9 = vld [vmem:[%s2600_s3 + $0x38] sm:$0xff]  ;;  %vm30_vm5 = vcmask 785408  }
  0xaa   :  { %1319 = vmatmul.msk.f32.vlgmr.msra.gmra.mxu0 %vm34_vm0, %v1302_v8  ;;  %1439 = vset.pattern.permute.xlu2 %v1492_v4 }
  0xad   :  { %v1788_v17 = vpop.permute.xlu1 %383 }
  0xaf   :  { %545 = vrot.lane.b32.xlu1 %v1786_v16, %s1494_s21  ;;  %v92_v20 = vpop.permute.xlu0 %91  ;;  %v1794_v21 = vpop.permute.xlu2 %972 }
  0xb0   :  { %vm136_vm6 = vcmp.eq.s32.totalorder %v72_v18, %v92_v20  ;;  %1438 = vset.pattern.permute.xlu1 %v1492_v4  ;;  %v993_v59 = vmul.f32 %v1794_v21, %v1774_v12 }
  0xb1   :  { %v1303_v22 = vsel %vm136_vm6, 1.0, %v2605_v49  ;;  %707 = vrot.lane.b32.xlu2 %v661_v19, %s1494_s21  ;;  %881 = vrot.lane.b32.xlu0 %v1708_v42, %s1496_s28  ;;  %v1313_v42 = vsel %vm146_vm14, 1.0, %v2605_v49  ;;  %vm1214_vm6 = vcmask 392192  }
  0xb2   :  { %1320 = vmatmul.msk.f32.gmra.mxu0 %vm34_vm0, %v1303_v22  ;;  %v654_v22 = vmul.f32 %v1719_v46, %v1865_v9 }
  0xb6   :  { %v637_v25 = vpop.permute.xlu1 %636 }
  0xb7   :  { %v660_v4 = vmul.f32 %v637_v25, %v1786_v16  ;;  %v113_v28 = vpop.permute.xlu0 %112  ;;  %v969_v29 = vpop.permute.xlu2 %968 }
  0xb8   :  { %vm143_vm8 = vcmp.eq.s32.totalorder %v79_v24, %v113_v28  ;;  %v992_v13 = vmul.f32 %v969_v29, %v1786_v16  ;;  %v1918_v28 = vld [vmem:[%s2600_s3 + $0x28] sm:$0xff] }
  0xb9   :  { %v1310_v30 = vsel %vm143_vm8, 1.0, %v2605_v49  ;;  %541 = vrot.lane.b32.xlu2 %v1806_v27, %s1494_s21  ;;  %705 = vrot.lane.b32.xlu1 %v660_v4, %s1494_s21  ;;  %vm1278_vm8 = vcmask 1048320  }
  0xba   :  { %879 = vrot.lane.b32.xlu0 %v1774_v12, %s1496_s28  ;;  %1321 = vmatmul.msk.f32.gmra.mxu0 %vm34_vm0, %v1304_v31  ;;  %v1925_v31 = vld [vmem:[%s2600_s3 + $0x20] sm:$0xff] }
  0xbb   :  { %1327 = vmatmul.msk.f32.vlgmr.msra.gmra.mxu1 %vm34_vm0, %v1310_v30 }
  0xbe   :  { %v629_v34 = vpop.permute.xlu1 %628 }
  0xbf   :  { %v658_v35 = vmul.f32 %v629_v34, %v1806_v27  ;;  %v116_v36 = vpop.permute.xlu0 %115  ;;  %v989_v34 = vmul.f32 %v1746_v0, %v1823_v37 }
  0xc0   :  { %vm144_vm10 = vcmp.eq.s32.totalorder %v80_v33, %v116_v36  ;;  %v1825_v38 = vpop.permute.xlu2 %608 }
  0xc1   :  { %v1311_v41 = vsel %vm144_vm10, 1.0, %v2605_v49  ;;  %539 = vrot.lane.b32.xlu1 %v1823_v37, %s1494_s21  ;;  %701 = vrot.lane.b32.xlu2 %v658_v35, %s1494_s21  ;;  %v653_v24 = vmul.f32 %v1825_v38, %v1904_v23 }
  0xc2   :  { %1322 = vmatmul.msk.f32.gmra.mxu0 %vm34_vm0, %v1305_v39 }
  0xc3   :  { %1328 = vmatmul.msk.f32.gmra.mxu1 %vm34_vm0, %v1311_v41 }
  0xc6   :  { %v621_v50 = vpop.permute.xlu1 %620 }
  0xc7   :  { %v656_v54 = vmul.f32 %v621_v50, %v1837_v45  ;;  %v119_v55 = vpop.permute.xlu0 %118 }
  0xc8   :  { %vm145_vm12 = vcmp.eq.s32.totalorder %v81_v48, %v119_v55  ;;  %v1842_v56 = vpop.permute.xlu2 %604  ;;  %v1959_v48 = vld [vmem:[%s2600_s3 + $0x18] sm:$0xff] }
  0xc9   :  { %v1312_v58 = vsel %vm145_vm12, 1.0, %v2605_v49  ;;  %537 = vrot.lane.b32.xlu1 %v1837_v45, %s1494_s21  ;;  %699 = vrot.lane.b32.xlu2 %v657_v51, %s1494_s21  ;;  %v652_v41 = vmul.f32 %v1842_v56, %v1918_v28 }
  0xca   :  { %697 = vrot.lane.b32.xlu0 %v656_v54, %s1494_s21  ;;  %1323 = vmatmul.msk.f32.gmra.mxu0 %vm34_vm0, %v1306_v60 }
  0xcb   :  { %1329 = vmatmul.msk.f32.gmra.mxu1 %vm34_vm0, %v1312_v58 }
  0xce   :  { %v617_v63 = vpop.permute.xlu1 %616 }
  0xcf   :  { %v110_v18 = vpop.permute.xlu0 %109  ;;  %v655_v19 = vmul.f32 %v617_v63, %v1859_v2 }
  0xd0   :  { %vm142_vm1 = vcmp.eq.s32.totalorder %v78_v62, %v110_v18 }
  0xd1   :  { %1041 = vrot.lane.b32.xlu1 %v994_v1, %s1496_s28  ;;  %535 = vrot.lane.b32.xlu2 %v1859_v2, %s1494_s21  ;;  %v1870_v43 = vpop.permute.xlu2 %952  ;;  %v1309_v21 = vsel %vm142_vm1, 1.0, %v2605_v49 }
  0xd2   :  { %533 = vrot.lane.b32.xlu0 %v1865_v9, %s1494_s21  ;;  %1324 = vmatmul.msk.f32.gmra.mxu0 %vm34_vm0, %v1307_v7  ;;  %v988_v60 = vmul.f32 %v1870_v43, %v1837_v45 }
  0xd3   :  { %1330 = vmatmul.msk.f32.gmra.mxu1 %vm34_vm0, %v1313_v42 }
  0xd7   :  { %v965_v11 = vpop.permute.xlu1 %964 }
  0xd8   :  { %v991_v46 = vmul.f32 %v965_v11, %v1762_v6  ;;  %v1920_v29 = vpop.permute.xlu0 %363 }
  0xd9   :  { %877 = vrot.lane.b32.xlu1 %v1786_v16, %s1496_s28  ;;  %1039 = vrot.lane.b32.xlu2 %v993_v59, %s1496_s28  ;;  %v1885_v8 = vpop.permute.xlu2 %948 }
  0xda   :  { %1037 = vrot.lane.b32.xlu0 %v992_v13, %s1496_s28  ;;  %1325 = vmatmul.msk.f32.gmra.mxu0 %vm34_vm0, %v1308_v15  ;;  %v987_v42 = vmul.f32 %v1885_v8, %v1859_v2  ;;  %v649_v15 = vmul.f32 %v1726_v52, %v1976_v40 }
  0xdf   :  { %v961_v20 = vpop.permute.xlu1 %960 }
  0xe0   :  { %v990_v33 = vmul.f32 %v961_v20, %v1806_v27  ;;  %v1940_v36 = vpop.permute.xlu0 %378 }
  0xe1   :  { %875 = vrot.lane.b32.xlu2 %v1762_v6, %s1496_s28  ;;  %695 = vrot.lane.b32.xlu1 %v655_v19, %s1494_s21  ;;  %v2024_v19 = vld [vmem:[%s2600_s3] sm:$0xff] }
  0xe2   :  { %873 = vrot.lane.b32.xlu0 %v1806_v27, %s1496_s28  ;;  %1326 = vmatmul.msk.f32.gmra.mxu0 %vm34_vm0, %v1309_v21  ;;  %v1897_v16 = vpop.permute.xlu2 %588  ;;  %v431_v21 = vmul.f32 %v1755_v3, %v2024_v19  ;;  %vm463_vm0 = vcmask 261120  }
  0xe3   :  { %v648_v52 = vmul.f32 %v1897_v16, %v1981_v61 }
  0xe8   :  { %v601_v25 = vpop.permute.xlu1 %600 }
  0xe9   :  { %693 = vrot.lane.b32.xlu2 %v654_v22, %s1494_s21  ;;  %531 = vrot.lane.b32.xlu1 %v1904_v23, %s1494_s21  ;;  %v1952_v27 = vpop.permute.xlu0 %549  ;;  %v651_v50 = vmul.f32 %v601_v25, %v1925_v31 }
  0xea   :  { %691 = vrot.lane.b32.xlu0 %v653_v24, %s1494_s21  ;;  %v1912_v4 = vpop.permute.xlu2 %584 }
  0xeb   :  { %v647_v3 = vmul.f32 %v1912_v4, %v2024_v19 }
  0xf0   :  { %v597_v30 = vpop.permute.xlu1 %596 }
  0xf1   :  { %529 = vrot.lane.b32.xlu2 %v1918_v28, %s1494_s21  ;;  %1035 = vrot.lane.b32.xlu1 %v991_v46, %s1496_s28  ;;  %v650_v51 = vmul.f32 %v597_v30, %v1959_v48 }
  0xf2   :  { %527 = vrot.lane.b32.xlu0 %v1925_v31, %s1494_s21 }
  0xf3   :  { %v1932_v32 = vpop.permute.xlu2 %928 }
  0xf9   :  { %871 = vrot.lane.b32.xlu1 %v1823_v37, %s1496_s28  ;;  %1033 = vrot.lane.b32.xlu2 %v990_v33, %s1496_s28  ;;  %v945_v35 = vpop.permute.xlu1 %944 }
  0xfa   :  { %1031 = vrot.lane.b32.xlu0 %v989_v34, %s1496_s28  ;;  %v986_v59 = vmul.f32 %v945_v35, %v1865_v9  ;;  %v432_v34 = vmul.f32 %v1728_v53, %v1981_v61  ;;  %v984_v53 = vmul.f32 %v1757_v5, %v1918_v28 }
  0xfb   :  { %v1943_v38 = vpop.permute.xlu2 %920 }
 0x101   :  { %689 = vrot.lane.b32.xlu1 %v652_v41, %s1494_s21  ;;  %869 = vrot.lane.b32.xlu2 %v1837_v45, %s1496_s28  ;;  %v941_v0 = vpop.permute.xlu1 %940 }
 0x102   :  { %867 = vrot.lane.b32.xlu0 %v1859_v2, %s1496_s28  ;;  %v985_v30 = vmul.f32 %v941_v0, %v1904_v23 }
 0x103   :  { %v548_v39 = vpop.permute.xlu2 %547  ;;  %v1954_v44 = vpop.f32.mrf.mxu2 }
 0x109   :  { %525 = vrot.lane.b32.xlu1 %v1959_v48, %s1494_s21  ;;  %687 = vrot.lane.b32.xlu2 %v651_v50, %s1494_s21  ;;  %v933_v54 = vpop.permute.xlu1 %932 }
 0x10a   :  { %685 = vrot.lane.b32.xlu0 %v650_v51, %s1494_s21  ;;  %v983_v35 = vmul.f32 %v933_v54, %v1925_v31  ;;  %v433_v54 = vmul.f32 %v1920_v29, %v1976_v40  ;;  %v982_v29 = vmul.f32 %v1932_v32, %v1959_v48 }
 0x10b   :  { %v708_v55 = vpop.permute.xlu2 %707  ;;  %v1967_v56 = vpop.permute.xlu0 %709 }
 0x10c   :  { %v1969_v58 = vpop.f32.mrf.mxu2 }
 0x111   :  { %1029 = vrot.lane.b32.xlu1 %v988_v60, %s1496_s28  ;;  %523 = vrot.lane.b32.xlu2 %v1976_v40, %s1494_s21  ;;  %v1986_v63 = vpop.permute.xlu1 %924 }
 0x112   :  { %521 = vrot.lane.b32.xlu0 %v1981_v61, %s1494_s21 }
 0x113   :  { %v1990_v45 = vpop.permute.xlu2 %541  ;;  %v1995_v43 = vpop.permute.xlu0 %543 }
 0x114   :  { %v1992_v1 = vpop.f32.mrf.mxu2 }
 0x115   :  { %v581_v7 = vmul.f32 %v548_v39, %v1992_v1 }
 0x117   :  { %v1999_v47 = vadd.f32 %v708_v55, %v581_v7 }
 0x119   :  { %865 = vrot.lane.b32.xlu1 %v1865_v9, %s1496_s28  ;;  %1027 = vrot.lane.b32.xlu2 %v987_v42, %s1496_s28  ;;  %v2005_v11 = vpop.permute.xlu1 %916 }
 0x11a   :  { %1025 = vrot.lane.b32.xlu0 %v986_v59, %s1496_s28 }
 0x11b   :  { %v2008_v13 = vpop.permute.xlu2 %701  ;;  %v2012_v62 = vpop.permute.xlu0 %703 }
 0x121   :  { %683 = vrot.lane.b32.xlu1 %v649_v15, %s1494_s21  ;;  %863 = vrot.lane.b32.xlu2 %v1904_v23, %s1496_s28  ;;  %v546_v8 = vpop.permute.xlu1 %545 }
 0x122   :  { %861 = vrot.lane.b32.xlu0 %v1918_v28, %s1496_s28  ;;  %v580_v32 = vmul.f32 %v546_v8, %v1969_v58 }
 0x123   :  { %v2019_v18 = vpop.permute.xlu2 %699  ;;  %v2037_v24 = vpop.permute.xlu0 %881 }
 0x127   :  { %v2028_v20 = vpop.f32.mrf.mxu0 }
 0x128   :  { %v335_v22 = vmul.f32 %v2024_v19, %v2028_v20 }
 0x129   :  { %519 = vrot.lane.b32.xlu1 %v2024_v19, %s1494_s21  ;;  %681 = vrot.lane.b32.xlu2 %v648_v52, %s1494_s21  ;;  %v434_v52 = vmul.f32 %v1769_v10, %v1959_v48 }
 0x12a   :  { %859 = vrot.lane.b32.xlu0 %v1925_v31, %s1496_s28  ;;  %v2041_v16 = vadd.f32 %v431_v21, %v335_v22  ;;  %v980_v21 = vmul.f32 %v1943_v38, %v1981_v61  ;;  %v579_v38 = vmul.f32 %v1995_v43, %v1954_v44 }
 0x12b   :  { %v2043_v25 = vpop.permute.xlu2 %535  ;;  %v706_v46 = vpop.permute.xlu1 %705 }
 0x12c   :  { %464 = vst.msk [vmem:[%s2604_s7] sm:$0xff] %vm463_vm0, %v2041_v16  ;;  %v2067_v50 = vpop.permute.xlu0 %879  ;;  %v2133_v8 = vadd.f32 %v2012_v62, %v579_v38 }
 0x12f   :  { %v2053_v33 = vpop.f32.mrf.mxu0 }
 0x130   :  { %v336_v41 = vmul.f32 %v1981_v61, %v2053_v33 }
 0x131   :  { %679 = vrot.lane.b32.xlu2 %v647_v3, %s1494_s21  ;;  %1023 = vrot.lane.b32.xlu1 %v985_v30, %s1496_s28 }
 0x132   :  { %1019 = vrot.lane.b32.xlu0 %v983_v35, %s1496_s28  ;;  %v2063_v39 = vadd.f32 %v432_v34, %v336_v41  ;;  %v981_v41 = vmul.f32 %v1986_v63, %v1976_v40 }
 0x133   :  { %v2065_v4 = vpop.permute.xlu2 %1039  ;;  %v540_v0 = vpop.permute.xlu1 %539 }
 0x134   :  { %465 = vst.msk [vmem:[%s2604_s7 + $0x8] sm:$0xff] %vm463_vm0, %v2063_v39 }
 0x137   :  { %v2076_v51 = vpop.f32.mrf.mxu0 }
 0x138   :  { %v2080_v55 = vpop.f32.mrf.mxu1  ;;  %v337_v60 = vmul.f32 %v1976_v40, %v2076_v51 }
 0x139   :  { %857 = vrot.lane.b32.xlu2 %v1959_v48, %s1496_s28  ;;  %1021 = vrot.lane.b32.xlu1 %v984_v53, %s1496_s28 }
 0x13a   :  { %853 = vrot.lane.b32.xlu0 %v1981_v61, %s1496_s28  ;;  %v2089_v7 = vadd.f32 %v433_v54, %v337_v60  ;;  %v2121_v61 = vpop.f32.mrf.mxu2 }
 0x13b   :  { %v2091_v5 = vpop.permute.xlu2 %875  ;;  %v538_v42 = vpop.permute.xlu1 %537  ;;  %v582_v43 = vmul.f32 %v1952_v27, %v2121_v61 }
 0x13c   :  { %v698_v59 = vpop.permute.xlu0 %697  ;;  %466 = vst.msk [vmem:[%s2604_s7 + $0x10] sm:$0xff] %vm463_vm0, %v2089_v7 }
 0x13f   :  { %v2100_v15 = vpop.f32.mrf.mxu0 }
 0x140   :  { %v2106_v22 = vpop.f32.mrf.mxu1  ;;  %v338_v3 = vmul.f32 %v1959_v48, %v2100_v15  ;;  %v2123_v48 = vadd.f32 %v706_v46, %v580_v32  ;;  %v435_v46 = vmul.f32 %v1736_v57, %v1925_v31  ;;  %v2156_v57 = vadd.f32 %v1967_v56, %v582_v43 }
 0x141   :  { %1017 = vrot.lane.b32.xlu2 %v982_v29, %s1496_s28  ;;  %855 = vrot.lane.b32.xlu1 %v1976_v40, %s1496_s28  ;;  %v436_v56 = vmul.f32 %v1940_v36, %v1918_v28  ;;  %v575_v36 = vmul.f32 %v2043_v25, %v2080_v55 }
 0x142   :  { %1013 = vrot.lane.b32.xlu0 %v980_v21, %s1496_s28  ;;  %v2115_v30 = vadd.f32 %v434_v52, %v338_v3  ;;  %v1373_v54 = vpack.i.bf16 %v2133_v8, %v2123_v48  ;;  %v1368_v21 = vpack.i.bf16 %v1999_v47, %v2156_v57  ;;  %v576_v3 = vmul.f32 %v538_v42, %v2106_v22 }
 0x143   :  { %v2117_v10 = vpop.permute.xlu2 %693  ;;  %v1042_v34 = vpop.permute.xlu1 %1041 }
 0x144   :  { %v2125_v35 = vpop.permute.xlu0 %533  ;;  %467 = vst.msk [vmem:[%s2604_s7 + $0x18] sm:$0xff] %vm463_vm0, %v2115_v30 }
 0x147   :  { %v2139_v53 = vpop.f32.mrf.mxu0 }
 0x148   :  { %v2145_v60 = vpop.f32.mrf.mxu1  ;;  %v339_v62 = vmul.f32 %v1925_v31, %v2139_v53  ;;  %v979_v31 = vmul.f32 %v2005_v11, %v2024_v19 }
 0x149   :  { %851 = vrot.lane.b32.xlu2 %v2024_v19, %s1496_s28  ;;  %1015 = vrot.lane.b32.xlu1 %v981_v41, %s1496_s28  ;;  %v914_v41 = vmul.f32 %v2037_v24, %v2121_v61  ;;  %v577_v11 = vmul.f32 %v540_v0, %v2145_v60 }
 0x14a   :  { %1374 = vrot.lane.b32.xlu0 %v1373_v54, %s1497_s15  ;;  %v2153_v27 = vadd.f32 %v435_v46, %v339_v62  ;;  %v2198_v54 = vadd.f32 %v698_v59, %v576_v3 }
 0x14b   :  { %v2158_v40 = vpop.permute.xlu2 %529  ;;  %v878_v63 = vpop.permute.xlu1 %877  ;;  %v2191_v43 = vadd.f32 %v1042_v34, %v914_v41 }
 0x14c   :  { %v1038_v29 = vpop.permute.xlu0 %1037  ;;  %468 = vst.msk [vmem:[%s2604_s7 + $0x20] sm:$0xff] %vm463_vm0, %v2153_v27 }
 0x14f   :  { %v2167_v52 = vpop.f32.mrf.mxu0 }
 0x150   :  { %v2174_v32 = vpop.f32.mrf.mxu1  ;;  %v340_v38 = vmul.f32 %v1918_v28, %v2167_v52  ;;  %v913_v28 = vmul.f32 %v2067_v50, %v1992_v1  ;;  %v2209_v50 = vadd.f32 %v2019_v18, %v577_v11  ;;  %v912_v11 = vmul.f32 %v878_v63, %v1969_v58 }
 0x151   :  { %v578_v19 = vmul.f32 %v1990_v45, %v2174_v32  ;;  %1011 = vrot.lane.b32.xlu1 %v979_v31, %s1496_s28  ;;  %1369 = vrot.lane.b32.xlu2 %v1368_v21, %s1497_s15  ;;  %v437_v21 = vmul.f32 %v1788_v17, %v1904_v23 }
 0x152   :  { %v2187_v42 = vadd.f32 %v436_v56, %v340_v38  ;;  %v2206_v25 = vadd.f32 %v2065_v4, %v913_v28 }
 0x153   :  { %v2194_v24 = vadd.f32 %v2008_v13, %v578_v19  ;;  %v1034_v0 = vpop.permute.xlu2 %1033  ;;  %v696_v46 = vpop.permute.xlu1 %695 }
 0x154   :  { %v2196_v45 = vadd.f32 %v696_v46, %v575_v36  ;;  %v874_v62 = vpop.permute.xlu0 %873  ;;  %469 = vst.msk [vmem:[%s2604_s7 + $0x28] sm:$0xff] %vm463_vm0, %v2187_v42  ;;  %v1383_v59 = vpack.i.bf16 %v2206_v25, %v2191_v43  ;;  %v911_v36 = vmul.f32 %v2091_v5, %v1954_v44 }
 0x155   :  { %v1378_v31 = vpack.i.bf16 %v2209_v50, %v2194_v24 }
 0x156   :  { %v1388_v13 = vpack.i.bf16 %v2196_v45, %v2198_v54 }
 0x157   :  { %v2215_v34 = vpop.f32.mrf.mxu0 }
 0x158   :  { %1389 = vrot.lane.b32.xlu0 %v1388_v13, %s1497_s15  ;;  %v341_v18 = vmul.f32 %v1904_v23, %v2215_v34 }
 0x159   :  { %1384 = vrot.lane.b32.xlu2 %v1383_v59, %s1496_s28  ;;  %1379 = vrot.lane.b32.xlu1 %v1378_v31, %s1497_s15  ;;  %v2248_v59 = vadd.f32 %v1038_v29, %v912_v11 }
 0x15a   :  { %v2226_v4 = vadd.f32 %v437_v21, %v341_v18 }
 0x15b   :  { %v870_v56 = vpop.permute.xlu2 %869  ;;  %v532_v3 = vpop.permute.xlu1 %531 }
 0x15c   :  { %v573_v38 = vmul.f32 %v532_v3, %v2215_v34  ;;  %v692_v41 = vpop.permute.xlu0 %691  ;;  %470 = vst.msk [vmem:[%s2604_s7 + $0x30] sm:$0xff] %vm463_vm0, %v2226_v4 }
 0x15e   :  { %v733_v17 = vadd.f32 %v692_v41, %v573_v38 }
 0x15f   :  { %v2234_v23 = vpop.f32.mrf.mxu0 }
 0x160   :  { %v574_v19 = vmul.f32 %v2125_v35, %v2234_v23  ;;  %750 = vst.msk [vmem:[%s2604_s7 + $0x30] sm:$0xff] %vm743_vm2, %v733_v17 }
 0x162   :  { %v2246_v28 = vadd.f32 %v2117_v10, %v574_v19  ;;  %v910_v10 = vmul.f32 %v874_v62, %v2174_v32 }
 0x163   :  { %v688_v46 = vpop.permute.xlu2 %687  ;;  %v1036_v13 = vpop.permute.xlu1 %1035 }
 0x164   :  { %v2250_v31 = vadd.f32 %v1036_v13, %v911_v36  ;;  %v528_v63 = vpop.permute.xlu0 %527  ;;  %v1398_v35 = vpack.i.bf16 %v733_v17, %v2246_v28  ;;  %v2264_v17 = vadd.f32 %v1034_v0, %v910_v10  ;;  %v572_v36 = vmul.f32 %v2158_v40, %v2167_v52 }
 0x165   :  { %v571_v21 = vmul.f32 %v528_v63, %v2139_v53 }
 0x166   :  { %v1393_v18 = vpack.i.bf16 %v2250_v31, %v2248_v59  ;;  %1399 = vrot.lane.b32.xlu2 %v1398_v35, %s1497_s15 }
 0x167   :  { %v731_v5 = vadd.f32 %v688_v46, %v571_v21 }
 0x168   :  { %1394 = vrot.lane.b32.xlu1 %v1393_v18, %s1496_s28 }
 0x169   :  { %748 = vst.msk [vmem:[%s2604_s7 + $0x20] sm:$0xff] %vm743_vm2, %v731_v5 }
 0x16b   :  { %v524_v29 = vpop.permute.xlu2 %523  ;;  %v872_v3 = vpop.permute.xlu1 %871 }
 0x16c   :  { %v909_v38 = vmul.f32 %v872_v3, %v2145_v60  ;;  %v1032_v41 = vpop.permute.xlu0 %1031 }
 0x16e   :  { %v2266_v11 = vadd.f32 %v1032_v41, %v909_v38 }
 0x170   :  { %v1403_v19 = vpack.i.bf16 %v2266_v11, %v2264_v17 }
 0x172   :  { %1404 = vrot.lane.b32.xlu0 %v1403_v19, %s1496_s28 }
 0x173   :  { %v1028_v46 = vpop.permute.xlu2 %1027  ;;  %v690_v13 = vpop.permute.xlu1 %689 }
 0x174   :  { %v732_v62 = vadd.f32 %v690_v13, %v572_v36  ;;  %v868_v63 = vpop.permute.xlu0 %867 }
 0x175   :  { %v907_v40 = vmul.f32 %v868_v63, %v2080_v55 }
 0x176   :  { %v1408_v35 = vpack.i.bf16 %v731_v5, %v732_v62  ;;  %749 = vst.msk [vmem:[%s2604_s7 + $0x28] sm:$0xff] %vm743_vm2, %v732_v62  ;;  %v908_v5 = vmul.f32 %v870_v56, %v2106_v22 }
 0x177   :  { %v2285_v19 = vadd.f32 %v1028_v46, %v907_v40 }
 0x178   :  { %1409 = vrot.lane.b32.xlu1 %v1408_v35, %s1497_s15 }
 0x17b   :  { %v864_v0 = vpop.permute.xlu2 %863  ;;  %v526_v21 = vpop.permute.xlu1 %525 }
 0x17c   :  { %v570_v18 = vmul.f32 %v526_v21, %v2100_v15  ;;  %v686_v10 = vpop.permute.xlu0 %685 }
 0x17e   :  { %v730_v3 = vadd.f32 %v686_v10, %v570_v18  ;;  %v569_v18 = vmul.f32 %v524_v29, %v2076_v51 }
 0x180   :  { %747 = vst.msk [vmem:[%s2604_s7 + $0x18] sm:$0xff] %vm743_vm2, %v730_v3 }
 0x183   :  { %v682_v38 = vpop.permute.xlu2 %681  ;;  %v1030_v41 = vpop.permute.xlu1 %1029 }
 0x184   :  { %v2287_v36 = vadd.f32 %v1030_v41, %v908_v5  ;;  %v522_v13 = vpop.permute.xlu0 %521 }
 0x185   :  { %v568_v62 = vmul.f32 %v522_v13, %v2053_v33 }
 0x186   :  { %v1413_v35 = vpack.i.bf16 %v2285_v19, %v2287_v36 }
 0x187   :  { %v728_v63 = vadd.f32 %v682_v38, %v568_v62 }
 0x188   :  { %1414 = vrot.lane.b32.xlu2 %v1413_v35, %s1496_s28 }
 0x189   :  { %745 = vst.msk [vmem:[%s2604_s7 + $0x8] sm:$0xff] %vm743_vm2, %v728_v63 }
 0x18b   :  { %v680_v56 = vpop.permute.xlu2 %679  ;;  %v866_v21 = vpop.permute.xlu1 %865 }
 0x18c   :  { %v1026_v46 = vpop.permute.xlu0 %1025 }
 0x193   :  { %v858_v10 = vpop.permute.xlu2 %857  ;;  %v684_v40 = vpop.permute.xlu1 %683 }
 0x194   :  { %v729_v5 = vadd.f32 %v684_v40, %v569_v18  ;;  %v862_v41 = vpop.permute.xlu0 %861  ;;  %v902_v38 = vmul.f32 %v858_v10, %v2100_v15  ;;  %v905_v15 = vmul.f32 %v864_v0, %v2215_v34 }
 0x196   :  { %v1418_v13 = vpack.i.bf16 %v729_v5, %v730_v3  ;;  %746 = vst.msk [vmem:[%s2604_s7 + $0x10] sm:$0xff] %vm743_vm2, %v729_v5  ;;  %v906_v3 = vmul.f32 %v866_v21, %v2234_v23 }
 0x198   :  { %1419 = vrot.lane.b32.xlu0 %v1418_v13, %s1497_s15  ;;  %v2317_v5 = vadd.f32 %v1026_v46, %v906_v3 }
 0x19b   :  { %v1018_v62 = vpop.permute.xlu2 %1017  ;;  %v520_v35 = vpop.permute.xlu1 %519 }
 0x19c   :  { %v1062_v49 = vadd.f32 %v1018_v62, %v902_v38  ;;  %v567_v29 = vmul.f32 %v520_v35, %v2028_v20  ;;  %v860_v26 = vpop.permute.xlu0 %859 }
 0x19d   :  { %v903_v10 = vmul.f32 %v860_v26, %v2139_v53  ;;  %v1452_v26 = vld [vmem:[%s2599_s2 + $0x70] sm:$0xff] }
 0x19e   :  { %v727_v14 = vadd.f32 %v680_v56, %v567_v29  ;;  %1079 = vst.msk [vmem:[%s2604_s7 + $0x18] sm:$0xff] %vm1075_vm3, %v1062_v49 }
 0x1a0   :  { %v1428_v18 = vpack.i.bf16 %v727_v14, %v728_v63  ;;  %744 = vst.msk [vmem:[%s2604_s7] sm:$0xff] %vm743_vm2, %v727_v14  ;;  %v904_v14 = vmul.f32 %v862_v41, %v2167_v52  ;;  %v1453_v52 = vld [vmem:[%s2599_s2 + $0x78] sm:$0xff]  ;;  %v1454_v41 = vld [vmem:[%s2599_s2 + $0x60] sm:$0xff] }
 0x1a2   :  { %1429 = vrot.lane.b32.xlu2 %v1428_v18, %s1497_s15 }
 0x1a3   :  { %v852_v56 = vpop.permute.xlu2 %851  ;;  %v1024_v40 = vpop.permute.xlu1 %1023 }
 0x1a4   :  { %v1065_v13 = vadd.f32 %v1024_v40, %v905_v15  ;;  %v1020_v38 = vpop.permute.xlu0 %1019 }
 0x1a5   :  { %v1063_v62 = vadd.f32 %v1020_v38, %v903_v10 }
 0x1a6   :  { %v1423_v63 = vpack.i.bf16 %v1065_v13, %v2317_v5  ;;  %1082 = vst.msk [vmem:[%s2604_s7 + $0x30] sm:$0xff] %vm1075_vm3, %v1065_v13 }
 0x1a7   :  { %1080 = vst.msk [vmem:[%s2604_s7 + $0x20] sm:$0xff] %vm1075_vm3, %v1063_v62 }
 0x1a8   :  { %1424 = vrot.lane.b32.xlu1 %v1423_v63, %s1496_s28  ;;  %v1456_v63 = vld [vmem:[%s2599_s2 + $0x50] sm:$0xff] }
 0x1aa   :  { %423 = vperm.xlu2 %1439, %v1452_v26  }
 0x1ab   :  { %v1022_v53 = vpop.permute.xlu1 %1021  ;;  %v1370_v34 = vpop.permute.xlu2 %1369 }
 0x1ac   :  { %v1064_v0 = vadd.f32 %v1022_v53, %v904_v14  ;;  %v854_v21 = vpop.permute.xlu0 %853  ;;  %v1371_v46 = vunpack.i.l.bf16 %v1370_v34  ;;  %v1372_v29 = vunpack.i.h.bf16 %v1370_v34 }
 0x1ad   :  { %v900_v3 = vmul.f32 %v854_v21, %v2053_v33 }
 0x1ae   :  { %v1433_v35 = vpack.i.bf16 %v1063_v62, %v1064_v0  ;;  %825 = vmatpush.msrb.mxu2 %v1371_v46  ;;  %1081 = vst.msk [vmem:[%s2604_s7 + $0x28] sm:$0xff] %vm1075_vm3, %v1064_v0  ;;  %v1455_v62 = vld [vmem:[%s2599_s2 + $0x68] sm:$0xff]  ;;  %v899_v46 = vmul.f32 %v852_v56, %v2028_v20 }
 0x1b0   :  { %826 = vmatpush.msrb.mxu2 %v1372_v29  ;;  %1434 = vrot.lane.b32.xlu0 %v1433_v35, %s1496_s28 }
 0x1b1   :  { %428 = vperm.xlu1 %1438, %v1453_v52  }
 0x1b2   :  { %413 = vperm.xlu2 %1439, %v1454_v41   ;;  %v1459_v41 = vld [vmem:[%s2599_s2 + $0x40] sm:$0xff] }
 0x1b3   :  { %v856_v18 = vpop.permute.xlu1 %855  ;;  %v1385_v15 = vpop.permute.xlu2 %1384 }
 0x1b4   :  { %v1014_v10 = vpop.permute.xlu0 %1013  ;;  %v1386_v40 = vunpack.i.l.bf16 %v1385_v15  ;;  %v1387_v38 = vunpack.i.h.bf16 %v1385_v15  ;;  %v901_v33 = vmul.f32 %v856_v18, %v2076_v51  ;;  %v1457_v51 = vld [vmem:[%s2599_s2 + $0x58] sm:$0xff]  ;;  %v1460_v15 = vld [vmem:[%s2599_s2 + $0x48] sm:$0xff] }
 0x1b5   :  { %v1060_v13 = vadd.f32 %v1014_v10, %v900_v3 }
 0x1b6   :  { %1157 = vmatpush.msra.mxu3 %v1386_v40 }
 0x1b7   :  { %1077 = vst.msk [vmem:[%s2604_s7 + $0x8] sm:$0xff] %vm1075_vm3, %v1060_v13 }
 0x1b8   :  { %1158 = vmatpush.msra.mxu3 %v1387_v38 }
 0x1b9   :  { %418 = vperm.xlu1 %1438, %v1455_v62  }
 0x1ba   :  { %403 = vperm.xlu2 %1439, %v1456_v63  }
 0x1bb   :  { %v1016_v14 = vpop.permute.xlu1 %1015 }
 0x1bc   :  { %v1061_v26 = vadd.f32 %v1016_v14, %v901_v33  ;;  %v1375_v53 = vpop.permute.xlu0 %1374  ;;  %v2608_v33 = vmov 2  }
 0x1bd   :  { %v1376_v34 = vunpack.i.l.bf16 %v1375_v53  ;;  %v1377_v21 = vunpack.i.h.bf16 %v1375_v53 }
 0x1be   :  { %v1440_v0 = vpack.i.bf16 %v1061_v26, %v1062_v49  ;;  %1078 = vst.msk [vmem:[%s2604_s7 + $0x10] sm:$0xff] %vm1075_vm3, %v1061_v26  ;;  %v1458_v49 = vld [vmem:[%s2599_s2 + $0x38] sm:$0xff]  ;;  %s1289_s2 = sshll.u32 %s2603_s6, 4  ;;  %s1290_s2 = int_to_ptr.hbm [resolvable:$true] %s1289_s2 }
 0x1bf   :  { %827 = vmatpush.msrb.mxu2 %v1376_v34 }
 0x1c0   :  { %1441 = vrot.lane.b32.xlu0 %v1440_v0, %s1496_s28  ;;  %v1400_v40 = vpop.permute.xlu2 %1399 }
 0x1c1   :  { %828 = vmatpush.msrb.mxu2 %v1377_v21  ;;  %408 = vperm.xlu1 %1438, %v1457_v51   ;;  %v1401_v38 = vunpack.i.l.bf16 %v1400_v40  ;;  %v1402_v62 = vunpack.i.h.bf16 %v1400_v40  ;;  %v2609_v40 = vlaneseq }
 0x1c2   :  { %388 = vperm.xlu2 %1439, %v1458_v49  }
 0x1c3   :  { %v1012_v35 = vpop.permute.xlu1 %1011 }
 0x1c4   :  { %v1059_v29 = vadd.f32 %v1012_v35, %v899_v46 }
 0x1c6   :  { %v1445_v52 = vpack.i.bf16 %v1059_v29, %v1060_v13  ;;  %1076 = vst.msk [vmem:[%s2604_s7] sm:$0xff] %vm1075_vm3, %v1059_v29 }
 0x1c8   :  { %1446 = vrot.lane.b32.xlu0 %v1445_v52, %s1496_s28 }
 0x1c9   :  { %393 = vperm.xlu1 %1438, %v1459_v41  }
 0x1ca   :  { %v1390_v3 = vpop.permute.xlu0 %1389 }
 0x1cb   :  { %v1380_v20 = vpop.permute.xlu1 %1379  ;;  %v1391_v10 = vunpack.i.l.bf16 %v1390_v3  ;;  %v1392_v13 = vunpack.i.h.bf16 %v1390_v3 }
 0x1cc   :  { %v1381_v56 = vunpack.i.l.bf16 %v1380_v20  ;;  %v1382_v18 = vunpack.i.h.bf16 %v1380_v20 }
 0x1ce   :  { %829 = vmatpush.msrb.mxu2 %v1381_v56  ;;  %v349_v56 = vmul.f32 %v1774_v12, %v1992_v1 }
 0x1d0   :  { %830 = vmatpush.msrb.mxu2 %v1382_v18  ;;  %398 = vperm.xlu0 %1366, %v1460_v15  }
 0x1d2   :  { %831 = vmatpush.msrb.mxu2 %v1391_v10 }
 0x1d4   :  { %832 = vmatpush.msrb.mxu2 %v1392_v13  ;;  %v2399_v13 = vshrl.u32 %v2609_v40, 7 }
 0x1d6   :  { %833 = vmatpush.msrb.mxu2 %v1401_v38  ;;  %v2404_v38 = vld [vmem:[%s2597_s0] ss:$0 sm:$0xff] }
 0x1d7   :  { %vm185_vm4 = vcmp.eq.s32.totalorder %v2399_v13, %v2404_v38 }
 0x1d8   :  { %834 = vmatpush.msrb.mxu2 %v1402_v62  ;;  %1450 = vset.pattern.permute.xlu0 %v2608_v33 }
 0x1da   :  { %v1395_v63 = vpop.permute.xlu1 %1394 }
 0x1db   :  { %v1396_v14 = vunpack.i.l.bf16 %v1395_v63  ;;  %v1397_v26 = vunpack.i.h.bf16 %v1395_v63 }
 0x1dd   :  { %1159 = vmatpush.msra.mxu3 %v1396_v14  ;;  %v345_v14 = vmul.f32 %v1823_v37, %v2145_v60  ;;  %v342_v60 = vmul.f32 %v1865_v9, %v2234_v23 }
 0x1df   :  { %1160 = vmatpush.msra.mxu3 %v1397_v26 }
 0x1e2   :  { %v1415_v0 = vpop.permute.xlu2 %1414 }
 0x1e3   :  { %v1416_v51 = vunpack.i.l.bf16 %v1415_v0  ;;  %v1417_v35 = vunpack.i.h.bf16 %v1415_v0 }
 0x1e4   :  { %v1405_v53 = vpop.permute.xlu0 %1404 }
 0x1e5   :  { %v1406_v34 = vunpack.i.l.bf16 %v1405_v53  ;;  %v1407_v21 = vunpack.i.h.bf16 %v1405_v53 }
 0x1e7   :  { %1161 = vmatpush.msra.mxu3 %v1406_v34 }
 0x1e9   :  { %1162 = vmatpush.msra.mxu3 %v1407_v21 }
 0x1ea   :  { %v1410_v46 = vpop.permute.xlu1 %1409 }
 0x1eb   :  { %1163 = vmatpush.msra.mxu3 %v1416_v51  ;;  %v1411_v49 = vunpack.i.l.bf16 %v1410_v46  ;;  %v1412_v29 = vunpack.i.h.bf16 %v1410_v46 }
 0x1ed   :  { %835 = vmatpush.msrb.mxu2 %v1411_v49  ;;  %1164 = vmatpush.msra.mxu3 %v1417_v35 }
 0x1ef   :  { %836 = vmatpush.msrb.mxu2 %v1412_v29 }
 0x1fc   :  { %v1430_v52 = vpop.permute.xlu2 %1429 }
 0x1fd   :  { %v1431_v62 = vunpack.i.l.bf16 %v1430_v52 }
 0x204   :  { %v424_v41 = vpop.permute.xlu2 %423 }
 0x205   :  { %v445_v20 = vmul.f32 %v424_v41, %v1774_v12 }
 0x207   :  { %v461_v3 = vadd.f32 %v445_v20, %v349_v56 }
 0x209   :  { %478 = vst.msk [vmem:[%s2604_s7 + $0x70] sm:$0xff] %vm463_vm0, %v461_v3 }
 0x20a   :  { %v1420_v18 = vpop.permute.xlu0 %1419  ;;  %758 = vst.msk [vmem:[%s2604_s7 + $0x70] sm:$0xff] %vm743_vm2, %v1999_v47  ;;  %v347_v47 = vmul.f32 %v1762_v6, %v1954_v44  ;;  %v1498_v44 = vmov 1.0  }
 0x20b   :  { %v1421_v15 = vunpack.i.l.bf16 %v1420_v18  ;;  %1090 = vst.msk [vmem:[%s2604_s7 + $0x70] sm:$0xff] %vm1075_vm3, %v2206_v25  ;;  %v1422_v10 = vunpack.i.h.bf16 %v1420_v18  ;;  %v1432_v25 = vunpack.i.h.bf16 %v1430_v52  ;;  %v1463_v52 = vld [vmem:[%s2600_s3 + $0x58] sm:$0xff] }
 0x20c   :  { %v414_v12 = vpop.permute.xlu2 %413  ;;  %v346_v20 = vmul.f32 %v1463_v52, %v2174_v32 }
 0x20d   :  { %v443_v1 = vmul.f32 %v414_v12, %v1762_v6  ;;  %837 = vmatpush.msrb.mxu2 %v1421_v15  ;;  %v343_v15 = vmul.f32 %v1859_v2, %v2080_v55  ;;  %v1464_v55 = vld [vmem:[%s2600_s3 + $0x48] sm:$0xff] }
 0x20f   :  { %838 = vmatpush.msrb.mxu2 %v1422_v10  ;;  %v459_v33 = vadd.f32 %v443_v1, %v347_v47 }
 0x211   :  { %839 = vmatpush.msrb.mxu2 %v1431_v62  ;;  %476 = vst.msk [vmem:[%s2604_s7 + $0x60] sm:$0xff] %vm463_vm0, %v459_v33 }
 0x212   :  { %756 = vst.msk [vmem:[%s2604_s7 + $0x60] sm:$0xff] %vm743_vm2, %v2133_v8 }
 0x213   :  { %840 = vmatpush.msrb.mxu2 %v1432_v25  ;;  %1088 = vst.msk [vmem:[%s2604_s7 + $0x60] sm:$0xff] %vm1075_vm3, %v2250_v31 }
 0x214   :  { %v404_v6 = vpop.permute.xlu2 %403  ;;  %1336 = vmatmul.msk.f32.vlgmr.msrb.gmra.mxu2 %vm185_vm4, %v1498_v44 }
 0x215   :  { %v441_v63 = vmul.f32 %v404_v6, %v1823_v37 }
 0x217   :  { %v457_v8 = vadd.f32 %v441_v63, %v345_v14 }
 0x219   :  { %474 = vst.msk [vmem:[%s2604_s7 + $0x50] sm:$0xff] %vm463_vm0, %v457_v8 }
 0x21a   :  { %v1425_v26 = vpop.permute.xlu1 %1424  ;;  %754 = vst.msk [vmem:[%s2604_s7 + $0x50] sm:$0xff] %vm743_vm2, %v2209_v50 }
 0x21b   :  { %v1426_v31 = vunpack.i.l.bf16 %v1425_v26  ;;  %1086 = vst.msk [vmem:[%s2604_s7 + $0x50] sm:$0xff] %vm1075_vm3, %v2266_v11  ;;  %v1427_v34 = vunpack.i.h.bf16 %v1425_v26  ;;  %v1461_v11 = vld [vmem:[%s2600_s3 + $0x78] sm:$0xff] }
 0x21c   :  { %v389_v37 = vpop.permute.xlu2 %388  ;;  %v350_v51 = vmul.f32 %v1461_v11, %v2121_v61 }
 0x21d   :  { %v438_v53 = vmul.f32 %v389_v37, %v1865_v9  ;;  %1165 = vmatpush.msra.mxu3 %v1426_v31 }
 0x21f   :  { %1166 = vmatpush.msra.mxu3 %v1427_v34  ;;  %v2448_v0 = vadd.f32 %v438_v53, %v342_v60 }
 0x221   :  { %471 = vst.msk [vmem:[%s2604_s7 + $0x38] sm:$0xff] %vm463_vm0, %v2448_v0 }
 0x222   :  { %v1435_v50 = vpop.permute.xlu0 %1434  ;;  %751 = vst.msk [vmem:[%s2604_s7 + $0x38] sm:$0xff] %vm743_vm2, %v2246_v28  ;;  %v1462_v28 = vld [vmem:[%s2600_s3 + $0x68] sm:$0xff] }
 0x223   :  { %v429_v23 = vpop.permute.xlu1 %428  ;;  %v1436_v9 = vunpack.i.l.bf16 %v1435_v50  ;;  %1083 = vst.msk [vmem:[%s2604_s7 + $0x38] sm:$0xff] %vm1075_vm3, %v2317_v5  ;;  %v1437_v46 = vunpack.i.h.bf16 %v1435_v50  ;;  %v348_v35 = vmul.f32 %v1462_v28, %v1969_v58 }
 0x224   :  { %v446_v21 = vmul.f32 %v1461_v11, %v429_v23 }
 0x225   :  { %1167 = vmatpush.msra.mxu3 %v1436_v9 }
 0x226   :  { %v462_v49 = vadd.f32 %v446_v21, %v350_v51 }
 0x227   :  { %1168 = vmatpush.msra.mxu3 %v1437_v46 }
 0x228   :  { %479 = vst.msk [vmem:[%s2604_s7 + $0x78] sm:$0xff] %vm463_vm0, %v462_v49  ;;  %481 = vmatpush.msrb.mxu1 %v462_v49 }
 0x229   :  { %759 = vst.msk [vmem:[%s2604_s7 + $0x78] sm:$0xff] %vm743_vm2, %v2156_v57 }
 0x22a   :  { %1091 = vst.msk [vmem:[%s2604_s7 + $0x78] sm:$0xff] %vm1075_vm3, %v2191_v43  ;;  %482 = vmatpush.msrb.mxu1 %v461_v3 }
 0x22b   :  { %v419_v61 = vpop.permute.xlu1 %418 }
 0x22c   :  { %v444_v5 = vmul.f32 %v1462_v28, %v419_v61 }
 0x22e   :  { %v460_v29 = vadd.f32 %v444_v5, %v348_v35 }
 0x230   :  { %477 = vst.msk [vmem:[%s2604_s7 + $0x68] sm:$0xff] %vm463_vm0, %v460_v29  ;;  %483 = vmatpush.msrb.mxu1 %v460_v29 }
 0x231   :  { %757 = vst.msk [vmem:[%s2604_s7 + $0x68] sm:$0xff] %vm743_vm2, %v2123_v48 }
 0x232   :  { %1089 = vst.msk [vmem:[%s2604_s7 + $0x68] sm:$0xff] %vm1075_vm3, %v2248_v59  ;;  %484 = vmatpush.msrb.mxu1 %v459_v33  ;;  %v1442_v58 = vpop.permute.xlu0 %1441 }
 0x233   :  { %v409_v57 = vpop.permute.xlu1 %408  ;;  %v1443_v43 = vunpack.i.l.bf16 %v1442_v58  ;;  %v1444_v56 = vunpack.i.h.bf16 %v1442_v58 }
 0x234   :  { %v442_v41 = vmul.f32 %v1463_v52, %v409_v57 }
 0x235   :  { %1169 = vmatpush.msra.mxu3 %v1443_v43 }
 0x236   :  { %v458_v48 = vadd.f32 %v442_v41, %v346_v20 }
 0x237   :  { %1170 = vmatpush.msra.mxu3 %v1444_v56 }
 0x238   :  { %475 = vst.msk [vmem:[%s2604_s7 + $0x58] sm:$0xff] %vm463_vm0, %v458_v48  ;;  %485 = vmatpush.msrb.mxu1 %v458_v48 }
 0x239   :  { %755 = vst.msk [vmem:[%s2604_s7 + $0x58] sm:$0xff] %vm743_vm2, %v2194_v24 }
 0x23a   :  { %1087 = vst.msk [vmem:[%s2604_s7 + $0x58] sm:$0xff] %vm1075_vm3, %v2264_v17  ;;  %486 = vmatpush.msrb.mxu1 %v457_v8  ;;  %v1447_v32 = vpop.permute.xlu0 %1446  ;;  %v344_v17 = vmul.f32 %v1464_v55, %v2106_v22 }
 0x23b   :  { %v394_v59 = vpop.permute.xlu1 %393  ;;  %v1448_v3 = vunpack.i.l.bf16 %v1447_v32  ;;  %v1449_v12 = vunpack.i.h.bf16 %v1447_v32 }
 0x23c   :  { %v439_v18 = vmul.f32 %v394_v59, %v1859_v2 }
 0x23d   :  { %1171 = vmatpush.msra.mxu3 %v1448_v3 }
 0x23e   :  { %v455_v1 = vadd.f32 %v439_v18, %v343_v15 }
 0x23f   :  { %1172 = vmatpush.msra.mxu3 %v1449_v12 }
 0x240   :  { %1337 = vmatmul.msk.f32.vlgmr.msra.gmra.mxu3 %vm185_vm4, %v1498_v44  ;;  %472 = vst.msk [vmem:[%s2604_s7 + $0x40] sm:$0xff] %vm463_vm0, %v455_v1 }
 0x241   :  { %752 = vst.msk [vmem:[%s2604_s7 + $0x40] sm:$0xff] %vm743_vm2, %v2196_v45 }
 0x242   :  { %v399_v2 = vpop.permute.xlu0 %398  ;;  %1084 = vst.msk [vmem:[%s2604_s7 + $0x40] sm:$0xff] %vm1075_vm3, %v2285_v19 }
 0x243   :  { %v440_v24 = vmul.f32 %v1464_v55, %v399_v2 }
 0x245   :  { %v456_v10 = vadd.f32 %v440_v24, %v344_v17 }
 0x247   :  { %473 = vst.msk [vmem:[%s2604_s7 + $0x48] sm:$0xff] %vm463_vm0, %v456_v10  ;;  %487 = vmatpush.msrb.mxu1 %v456_v10 }
 0x248   :  { %753 = vst.msk [vmem:[%s2604_s7 + $0x48] sm:$0xff] %vm743_vm2, %v2198_v54  ;;  %v1187_v54 = vld [vmem:[%s2602_s5 + $0x8] sm:$0xff] }
 0x249   :  { %1085 = vst.msk [vmem:[%s2604_s7 + $0x48] sm:$0xff] %vm1075_vm3, %v2287_v36  ;;  %488 = vmatpush.msrb.mxu1 %v455_v1 }
 0x24b   :  { %489 = vmatpush.msrb.mxu1 %v2448_v0 }
 0x24d   :  { %490 = vmatpush.msrb.mxu1 %v2226_v4  ;;  %v1186_v4 = vld [vmem:[%s2602_s5] sm:$0xff] }
 0x24f   :  { %491 = vmatpush.msrb.mxu1 %v2187_v42  ;;  %v2610_v42 = vmov 0.0  }
 0x250   :  { %31 = vst.msk [vmem:[#allocation2] sm:$0xff] %vm30_vm5, %v2610_v42 }
 0x251   :  { %492 = vmatpush.msrb.mxu1 %v2153_v27 }
 0x253   :  { %493 = vmatpush.msrb.mxu1 %v2115_v30 }
 0x255   :  { %494 = vmatpush.msrb.mxu1 %v2089_v7 }
 0x257   :  { %495 = vmatpush.msrb.mxu1 %v2063_v39  ;;  %v480_v30 = vld [vmem:[#allocation2] sm:$0xff]  ;;  %v1188_v39 = vld [vmem:[%s2602_s5 + $0x10] sm:$0xff] }
 0x259   :  { %496 = vmatpush.msrb.mxu1 %v2041_v16  ;;  %v1189_v16 = vld [vmem:[%s2602_s5 + $0x18] sm:$0xff]  ;;  %s1499_s5 = smov 48  }
 0x25a   :  { %1335 = vmatmul.msk.f32.vlgmr.msrb.gmra.mxu1 %vm185_vm4, %v1498_v44  ;;  %1266 = vmatpush.msrb.mxu3 %v1189_v16 }
 0x25b   :  { %1206 = vmatpush.msra.mxu1 %v1189_v16  ;;  %1234 = vmatpush.msra.mxu2 %v1189_v16 }
 0x25c   :  { %1267 = vmatpush.msrb.mxu3 %v1188_v39 }
 0x25d   :  { %1207 = vmatpush.msra.mxu1 %v1188_v39  ;;  %1235 = vmatpush.msra.mxu2 %v1188_v39 }
 0x25e   :  { %1268 = vmatpush.msrb.mxu3 %v1187_v54 }
 0x25f   :  { %1208 = vmatpush.msra.mxu1 %v1187_v54  ;;  %1236 = vmatpush.msra.mxu2 %v1187_v54 }
 0x260   :  { %1269 = vmatpush.msrb.mxu3 %v1186_v4 }
 0x261   :  { %1209 = vmatpush.msra.mxu1 %v1186_v4  ;;  %1237 = vmatpush.msra.mxu2 %v1186_v4 }
 0x297   :  { %v842_v22 = vpop.f32.mrf.mxu2 }
 0x298   :  { %846 = vrot.lane.b32.xlu1 %v842_v22, %s1494_s21 }
 0x2c3   :  { %v1174_v27 = vpop.f32.mrf.mxu3 }
 0x2c4   :  { %1178 = vrot.lane.b32.xlu2 %v1174_v27, %s1496_s28 }
 0x2d7   :  { %v498_v7 = vpop.f32.mrf.mxu1 }
 0x2d8   :  { %v501_v45 = vadd.f32 %v498_v7, %v480_v30 }
 0x2da   :  { %502 = vst.msk [vmem:[#allocation2] sm:$0xff] %vm463_vm0, %v501_v45 }
 0x2e1   :  { %v760_v19 = vld [vmem:[#allocation2] sm:$0xff] }
 0x30a   :  { %v847_v36 = vpop.permute.xlu1 %846 }
 0x30b   :  { %v849_v40 = vadd.f32 %v847_v36, %v760_v19 }
 0x30d   :  { %850 = vst.msk [vmem:[#allocation2] sm:$0xff] %vm743_vm2, %v849_v40 }
 0x314   :  { %v1092_v13 = vld [vmem:[#allocation2] sm:$0xff] }
 0x31e   :  { %v1179_v38 = vpop.permute.xlu2 %1178 }
 0x31f   :  { %v1181_v47 = vadd.f32 %v1179_v38, %v1092_v13 }
 0x321   :  { %1182 = vst.msk [vmem:[#allocation2] sm:$0xff] %vm1075_vm3, %v1181_v47 }
 0x328   :  { %v1248_v62 = vld [vmem:[#allocation2] sm:$0xff] }
 0x329   :  { %1250 = vrot.lane.b32.xlu1 %v1248_v62, %s1496_s28  ;;  %1218 = vrot.lane.b32.xlu0 %v1248_v62, %s1497_s15  ;;  %s1500_s28 = smov [#allocation5]  }
 0x32a   :  { %1338 = vmatmul.msk.f32.vlgmr.msra.gmra.mxu1 %vm463_vm0, %v1248_v62  ;;  %s1287_s1 = sshll.u32 %s1500_s28, 4  ;;  %s1288_s1 = int_to_ptr.vmem [resolvable:$true] %s1287_s1 }
 0x39b   :  { %v1251_v33 = vpop.permute.xlu1 %1250  ;;  %v1219_v25 = vpop.permute.xlu0 %1218 }
 0x39c   :  { %1339 = vmatmul.msk.f32.vlgmr.msra.gmra.mxu2 %vm463_vm0, %v1219_v25  ;;  %1340 = vmatmul.msk.f32.vlgmr.msrb.gmra.mxu3 %vm463_vm0, %v1251_v33 }
 0x3a7   :  { %v1211_v6 = vpop.f32.mrf.mxu1 }
 0x3a8   :  { %1215 = vst.msk [vmem:[#allocation5] sm:$0xff] %vm1214_vm6, %v1211_v6 }
 0x41f   :  { %v1239_v44 = vpop.f32.mrf.mxu2  ;;  %v1271_v63 = vpop.f32.mrf.mxu3 }
 0x420   :  { %1275 = vrot.lane.b32.xlu0 %v1271_v63, %s1497_s15  ;;  %1243 = vrot.lane.b32.xlu2 %v1239_v44, %s1499_s5 }
 0x47a   :  { %v1244_v14 = vpop.permute.xlu2 %1243 }
 0x47b   :  { %1247 = vst.msk [vmem:[#allocation5] sm:$0xff] %vm1246_vm7, %v1244_v14 }
 0x492   :  { %v1276_v8 = vpop.permute.xlu0 %1275 }
 0x493   :  { %1279 = vst.msk [vmem:[#allocation5] sm:$0xff] %vm1278_vm8, %v1276_v8 }
 0x494   :  { %1281 = vst.msk [vmem:[#allocation5 + $0x8] sm:$0xff] %vm1280_vm9, %v1276_v8 }
 0x495   :  { %1292 = dma.vmem_to_hbm [thread:$0]  %s1288_s1, 256, %s1290_s2, [#allocation6]  }
 0x496   :  { %1489 = dma.done.wait [#allocation6], 256  }
 0x497   :  { %1490 = vsyncadd [#allocation6], 4294967040 }
 0x498   :  { %1301 = vsyncpa [#allocation6], 1 }

</bundles_post_ra>
